<compile_context>
chip_gen: v7x
topology: tpu7x:2x2x1
jax: 0.10.0
libtpu: 0.0.40
codegen_flags: <defaults>
</compile_context>

<pallas_src>
import functools

import jax
import jax.numpy as jnp
import numpy as np
from jax import lax
from jax.experimental import pallas as pl
from jax.experimental.pallas import tpu as pltpu


def _clstm_kernel(patch_ref, w_ref, b_ref, gamma_ref, beta_ref, gmat_ref,
                  cx_ref, hy_ref, cy_ref, *, F, HW, eps):
    """One grid step = one batch element.

    patch_ref: (1, Kp, HW)  bf16  im2col columns (K padded to Kp, zeros)
    w_ref:     (4F, Kp)     bf16  conv weight, rows = output channels
    b_ref:     (4F, 1)      f32   conv bias
    gamma_ref: (4F, 1)      f32   GroupNorm scale
    beta_ref:  (4F, 1)      f32   GroupNorm shift
    gmat_ref:  (4F, 4F)     f32   group-average matrix (1/(gs*HW) in-group)
    cx_ref:    (1, F, HW)   f32   previous cell state
    hy_ref:    (1, F, HW)   f32   new hidden state (output)
    cy_ref:    (1, F, HW)   f32   new cell state   (output)
    """
    # ---- convolution: one lane-dense MXU matmul, bf16 in / f32 accumulate ----
    acc = jnp.dot(w_ref[...], patch_ref[0],
                  preferred_element_type=jnp.float32)          # (4F, HW) f32

    # ---- fused single-pass GroupNorm ----
    b = b_ref[...]                                             # (4F, 1)
    s = jnp.sum(acc, axis=1, keepdims=True)                    # per-channel sum
    ss = jnp.sum(acc * acc, axis=1, keepdims=True)             # per-channel sum sq
    # Fold the conv bias analytically into the stats (no extra pass over acc):
    #   sum(x+b)   = s  + HW*b
    #   sum(x+b)^2 = ss + 2*b*s + HW*b^2
    s_b = s + HW * b
    ss_b = ss + 2.0 * b * s + HW * (b * b)
    # Group mean / E[x^2] broadcast back per channel via one tiny matmul.
    mean_c = jnp.dot(gmat_ref[...], s_b, preferred_element_type=jnp.float32)
    e2_c = jnp.dot(gmat_ref[...], ss_b, preferred_element_type=jnp.float32)
    var_c = e2_c - mean_c * mean_c                             # biased (PyTorch GN)
    scale_c = gamma_ref[...] * lax.rsqrt(var_c + eps)          # (4F, 1)
    shift_c = beta_ref[...] + (b - mean_c) * scale_c           # (4F, 1)
    normed = acc * scale_c + shift_c                           # single fused pass

    # ---- LSTM gates: sublane slices of the (4F, HW) tensor, all lane-dense ----
    i_g = jax.nn.sigmoid(normed[0 * F:1 * F, :])
    f_g = jax.nn.sigmoid(normed[1 * F:2 * F, :])
    g_g = jnp.tanh(normed[2 * F:3 * F, :])
    o_g = jax.nn.sigmoid(normed[3 * F:4 * F, :])

    cx = cx_ref[0]                                             # (F, HW)
    cy = f_g * cx + i_g * g_g
    hy = o_g * jnp.tanh(cy)

    hy_ref[0] = hy.astype(hy_ref.dtype)
    cy_ref[0] = cy.astype(cy_ref.dtype)


def clstm_cell_forward(x_nchw, hx, cx, w_oihw, b, gamma, beta, *,
                       k_size, num_features, group_norm_size, eps=1e-5,
                       matmul_dtype=jnp.bfloat16):
    """x: (B, Cin, H, W); hx/cx: (B, F, H, W); w: (4F, Cin+F, k, k) (OIHW).

    Returns (hy, cy), both (B, F, H, W) (NCHW, matching the PyTorch module).
    """
    B, Cin, H, W = x_nchw.shape
    F = num_features
    C4 = 4 * F
    assert C4 % group_norm_size == 0
    k = k_size
    pad = (k - 1) // 2
    Ct = Cin + F
    HW = H * W
    K = k * k * Ct
    Kp = ((K + 127) // 128) * 128          # lane-align contraction dim (324->384)

    # TODO(synk): for the sequence path (seq_forward) the concat/pad/im2col
    # below should be hoisted / fused per-sequence instead of per timestep.
    combined = jnp.concatenate([x_nchw, hx], axis=1)                # (B, Ct, H, W)
    combined_p = jnp.pad(combined, ((0, 0), (0, 0), (pad, pad), (pad, pad)))

    # im2col in "transposed" layout: rows indexed by (tap, channel), columns by
    # flattened spatial position -> LHS (B, Kp, HW), RHS weight (4F, Kp).
    taps = [combined_p[:, :, dy:dy + H, dx:dx + W].reshape(B, Ct, HW)
            for dy in range(k) for dx in range(k)]
    patches = jnp.concatenate(taps, axis=1)                         # (B, K, HW)
    patches = jnp.pad(patches, ((0, 0), (0, Kp - K), (0, 0)))
    patches = patches.astype(matmul_dtype)

    # OIHW (4F, Ct, k, k) -> (4F, k, k, Ct) -> (4F, K): row order matches taps.
    w_r = jnp.transpose(w_oihw, (0, 2, 3, 1)).reshape(C4, K)
    w_r = jnp.pad(w_r, ((0, 0), (0, Kp - K))).astype(matmul_dtype)

    b2 = b.reshape(C4, 1).astype(jnp.float32)
    gamma2 = gamma.reshape(C4, 1).astype(jnp.float32)
    beta2 = beta.reshape(C4, 1).astype(jnp.float32)

    gs = group_norm_size
    group_id = jnp.arange(C4) // gs
    gmat = (group_id[:, None] == group_id[None, :]).astype(jnp.float32)
    gmat = gmat / float(gs * HW)                                    # (4F, 4F)

    cx2 = cx.reshape(B, F, HW).astype(jnp.float32)

    kernel = functools.partial(_clstm_kernel, F=F, HW=HW, eps=eps)

    grid_spec = pltpu.PrefetchScalarGridSpec(
        num_scalar_prefetch=0,
        grid=(B,),
        in_specs=[
            pl.BlockSpec((1, Kp, HW), lambda bi: (bi, 0, 0)),   # im2col LHS
            pl.BlockSpec((C4, Kp), lambda bi: (0, 0)),          # weight
            pl.BlockSpec((C4, 1), lambda bi: (0, 0)),           # bias
            pl.BlockSpec((C4, 1), lambda bi: (0, 0)),           # gamma
            pl.BlockSpec((C4, 1), lambda bi: (0, 0)),           # beta
            pl.BlockSpec((C4, C4), lambda bi: (0, 0)),          # group-avg matrix
            pl.BlockSpec((1, F, HW), lambda bi: (bi, 0, 0)),    # cx
        ],
        out_specs=[
            pl.BlockSpec((1, F, HW), lambda bi: (bi, 0, 0)),    # hy
            pl.BlockSpec((1, F, HW), lambda bi: (bi, 0, 0)),    # cy
        ],
    )

    hy, cy = pl.pallas_call(
        kernel,
        out_shape=(jax.ShapeDtypeStruct((B, F, HW), jnp.float32),
                   jax.ShapeDtypeStruct((B, F, HW), jnp.float32)),
        grid_spec=grid_spec,
        compiler_params=pltpu.CompilerParams(
            dimension_semantics=("parallel",),       # batch steps -> both v7x TCs
            vmem_limit_bytes=32 * 1024 * 1024),
    )(patches, w_r, b2, gamma2, beta2, gmat, cx2)

    return hy.reshape(B, F, H, W), cy.reshape(B, F, H, W)


def clstm_cell_forward_ref(x_nchw, hx, cx, w_oihw, b, gamma, beta, *,
                           num_features, group_norm_size, eps=1e-5,
                           conv_dtype=jnp.float32):
    """Pure-JAX reference in the module's NCHW convention."""
    F = num_features
    C4 = 4 * F
    gs = group_norm_size
    G = C4 // gs
    combined = jnp.concatenate([x_nchw, hx], axis=1)
    gates = lax.conv_general_dilated(
        combined.astype(conv_dtype), w_oihw.astype(conv_dtype),
        window_strides=(1, 1), padding='SAME',
        dimension_numbers=('NCHW', 'OIHW', 'NCHW'),
        preferred_element_type=jnp.float32,
        precision=lax.Precision.HIGHEST) + b.reshape(1, C4, 1, 1)
    B, _, H, W = gates.shape
    g5 = gates.reshape(B, G, gs, H, W)
    m = jnp.mean(g5, axis=(2, 3, 4), keepdims=True)
    v = jnp.mean((g5 - m) ** 2, axis=(2, 3, 4), keepdims=True)
    normed = ((g5 - m) * lax.rsqrt(v + eps)).reshape(B, C4, H, W)
    normed = normed * gamma.reshape(1, C4, 1, 1) + beta.reshape(1, C4, 1, 1)
    i_g = jax.nn.sigmoid(normed[:, 0 * F:1 * F])
    f_g = jax.nn.sigmoid(normed[:, 1 * F:2 * F])
    c_g = jnp.tanh(normed[:, 2 * F:3 * F])
    o_g = jax.nn.sigmoid(normed[:, 3 * F:4 * F])
    cy = f_g * cx + i_g * c_g
    hy = o_g * jnp.tanh(cy)
    return hy, cy


if __name__ == "__main__":
    # Small shapes consistent with the module (PyTorch NCHW convention).
    B, Cin, H, W = 2, 4, 16, 16
    num_features = 32
    group_norm_size = 32
    k_size = 3
    Ct = Cin + num_features
    C4 = 4 * num_features

    key = jax.random.PRNGKey(0)
    kx, kw, kb = jax.random.split(key, 3)

    x = jax.random.normal(kx, (B, Cin, H, W), jnp.float32)                 # NCHW
    # Conv2d weight in OIHW; GroupNorm affine uses PyTorch defaults (1, 0).
    w = 0.05 * jax.random.normal(kw, (C4, Ct, k_size, k_size), jnp.float32)
    b = 0.05 * jax.random.normal(kb, (C4,), jnp.float32)
    gamma = jnp.ones((C4,), jnp.float32)
    beta = jnp.zeros((C4,), jnp.float32)

    # forward(): hidden_state is None -> hx = cx = zeros.
    hx = jnp.zeros((B, num_features, H, W), jnp.float32)
    cx = jnp.zeros((B, num_features, H, W), jnp.float32)

    hy, cy = clstm_cell_forward(
        x, hx, cx, w, b, gamma, beta,
        k_size=k_size, num_features=num_features,
        group_norm_size=group_norm_size)
    hy = jax.block_until_ready(hy)
    cy = jax.block_until_ready(cy)

    # (1) Tight check vs a reference using the same bf16 matmul-input precision
    #     (validates the kernel's conv/GN/gate implementation).
    hy_rb, cy_rb = clstm_cell_forward_ref(
        x, hx, cx, w, b, gamma, beta,
        num_features=num_features, group_norm_size=group_norm_size,
        conv_dtype=jnp.bfloat16)
    np.testing.assert_allclose(np.asarray(hy), np.asarray(hy_rb),
                               rtol=2e-3, atol=2e-3)
    np.testing.assert_allclose(np.asarray(cy), np.asarray(cy_rb),
                               rtol=2e-3, atol=2e-3)

    # (2) Module-semantics check vs the full-f32 reference (looser tolerance
    #     accounts for the bf16 MXU inputs of the optimized conv).
    hy_rf, cy_rf = clstm_cell_forward_ref(
        x, hx, cx, w, b, gamma, beta,
        num_features=num_features, group_norm_size=group_norm_size,
        conv_dtype=jnp.float32)
    np.testing.assert_allclose(np.asarray(hy), np.asarray(hy_rf),
                               rtol=3e-2, atol=3e-2)
    np.testing.assert_allclose(np.asarray(cy), np.asarray(cy_rf),
                               rtol=3e-2, atol=3e-2)

    # hy is what the PyTorch module's forward() returns (NCHW).
    assert hy.shape == (B, num_features, H, W)
    print("KERNEL_OK")
</pallas_src>

<mosaic_0001>
module attributes {stable_mosaic.version = 11 : i64} {
  func.func @_clstm_kernel(%arg0: i32, %arg1: memref<1x384x256xbf16, #tpu.memory_space<vmem>>, %arg2: memref<128x384xbf16, #tpu.memory_space<vmem>>, %arg3: memref<128x1xf32, #tpu.memory_space<vmem>>, %arg4: memref<128x1xf32, #tpu.memory_space<vmem>>, %arg5: memref<128x1xf32, #tpu.memory_space<vmem>>, %arg6: memref<128x128xf32, #tpu.memory_space<vmem>>, %arg7: memref<1x32x256xf32, #tpu.memory_space<vmem>>, %arg8: memref<1x32x256xf32, #tpu.memory_space<vmem>>, %arg9: memref<1x32x256xf32, #tpu.memory_space<vmem>>) attributes {dimension_semantics = [#tpu.dimension_semantics<parallel>], iteration_bounds = array<i64: 2>, scalar_prefetch = 0 : i64, scratch_operands = 0 : i64, tpu.core_type = #tpu.core_type<tc>, window_params = [{transform_indices = @transform_0, window_bounds = array<i64: 1, 384, 256>}, {pipeline_mode = #tpu.pipeline_mode<synchronous>, transform_indices = @transform_1, window_bounds = array<i64: 128, 384>}, {pipeline_mode = #tpu.pipeline_mode<synchronous>, transform_indices = @transform_2, window_bounds = array<i64: 128, 1>}, {pipeline_mode = #tpu.pipeline_mode<synchronous>, transform_indices = @transform_3, window_bounds = array<i64: 128, 1>}, {pipeline_mode = #tpu.pipeline_mode<synchronous>, transform_indices = @transform_4, window_bounds = array<i64: 128, 1>}, {pipeline_mode = #tpu.pipeline_mode<synchronous>, transform_indices = @transform_5, window_bounds = array<i64: 128, 128>}, {transform_indices = @transform_6, window_bounds = array<i64: 1, 32, 256>}, {transform_indices = @transform_7, window_bounds = array<i64: 1, 32, 256>}, {transform_indices = @transform_8, window_bounds = array<i64: 1, 32, 256>}]} {
    %c0 = arith.constant 0 : index
    %c0_0 = arith.constant 0 : index
    %0 = vector.load %arg2[%c0, %c0_0] : memref<128x384xbf16, #tpu.memory_space<vmem>>, vector<128x384xbf16>
    %c0_1 = arith.constant 0 : index
    %c0_2 = arith.constant 0 : index
    %c0_3 = arith.constant 0 : index
    %1 = vector.load %arg1[%c0_1, %c0_2, %c0_3] : memref<1x384x256xbf16, #tpu.memory_space<vmem>>, vector<1x384x256xbf16>
    %2 = vector.shape_cast %1 : vector<1x384x256xbf16> to vector<384x256xbf16>
    %cst = arith.constant dense<0.000000e+00> : vector<128x256xf32>
    %3 = tpu.matmul %0, %2, %cst {dimension_numbers = #tpu.dot_dimension_numbers<[1], [0], [0], [1], [0, 0, 1, 1], [], []>} : vector<128x384xbf16>, vector<384x256xbf16>, vector<128x256xf32> -> vector<128x256xf32>
    %c0_4 = arith.constant 0 : index
    %c0_5 = arith.constant 0 : index
    %4 = vector.load %arg3[%c0_4, %c0_5] : memref<128x1xf32, #tpu.memory_space<vmem>>, vector<128x1xf32>
    %cst_6 = arith.constant dense<0.000000e+00> : vector<128xf32>
    %5 = vector.multi_reduction <add>, %3, %cst_6 [1] : vector<128x256xf32> to vector<128xf32>
    %6 = vector.shape_cast %5 : vector<128xf32> to vector<128x1xf32>
    %7 = arith.mulf %3, %3 : vector<128x256xf32>
    %cst_7 = arith.constant dense<0.000000e+00> : vector<128xf32>
    %8 = vector.multi_reduction <add>, %7, %cst_7 [1] : vector<128x256xf32> to vector<128xf32>
    %9 = vector.shape_cast %8 : vector<128xf32> to vector<128x1xf32>
    %cst_8 = arith.constant 2.560000e+02 : f32
    %10 = vector.broadcast %cst_8 : f32 to vector<128x1xf32>
    %11 = arith.mulf %10, %4 : vector<128x1xf32>
    %12 = arith.addf %6, %11 : vector<128x1xf32>
    %cst_9 = arith.constant 2.000000e+00 : f32
    %13 = vector.broadcast %cst_9 : f32 to vector<128x1xf32>
    %14 = arith.mulf %13, %4 : vector<128x1xf32>
    %15 = arith.mulf %14, %6 : vector<128x1xf32>
    %16 = arith.addf %9, %15 : vector<128x1xf32>
    %17 = arith.mulf %4, %4 : vector<128x1xf32>
    %cst_10 = arith.constant 2.560000e+02 : f32
    %18 = vector.broadcast %cst_10 : f32 to vector<128x1xf32>
    %19 = arith.mulf %18, %17 : vector<128x1xf32>
    %20 = arith.addf %16, %19 : vector<128x1xf32>
    %c0_11 = arith.constant 0 : index
    %c0_12 = arith.constant 0 : index
    %21 = vector.load %arg6[%c0_11, %c0_12] : memref<128x128xf32, #tpu.memory_space<vmem>>, vector<128x128xf32>
    %cst_13 = arith.constant dense<0.000000e+00> : vector<128x1xf32>
    %22 = tpu.matmul %21, %12, %cst_13 {dimension_numbers = #tpu.dot_dimension_numbers<[1], [0], [0], [1], [0, 0, 1, 1], [], []>} : vector<128x128xf32>, vector<128x1xf32>, vector<128x1xf32> -> vector<128x1xf32>
    %c0_14 = arith.constant 0 : index
    %c0_15 = arith.constant 0 : index
    %23 = vector.load %arg6[%c0_14, %c0_15] : memref<128x128xf32, #tpu.memory_space<vmem>>, vector<128x128xf32>
    %cst_16 = arith.constant dense<0.000000e+00> : vector<128x1xf32>
    %24 = tpu.matmul %23, %20, %cst_16 {dimension_numbers = #tpu.dot_dimension_numbers<[1], [0], [0], [1], [0, 0, 1, 1], [], []>} : vector<128x128xf32>, vector<128x1xf32>, vector<128x1xf32> -> vector<128x1xf32>
    %25 = arith.mulf %22, %22 : vector<128x1xf32>
    %26 = arith.subf %24, %25 : vector<128x1xf32>
    %c0_17 = arith.constant 0 : index
    %c0_18 = arith.constant 0 : index
    %27 = vector.load %arg4[%c0_17, %c0_18] : memref<128x1xf32, #tpu.memory_space<vmem>>, vector<128x1xf32>
    %cst_19 = arith.constant 9.99999974E-6 : f32
    %28 = vector.broadcast %cst_19 : f32 to vector<128x1xf32>
    %29 = arith.addf %26, %28 : vector<128x1xf32>
    %30 = math.rsqrt %29 : vector<128x1xf32>
    %31 = arith.mulf %27, %30 : vector<128x1xf32>
    %c0_20 = arith.constant 0 : index
    %c0_21 = arith.constant 0 : index
    %32 = vector.load %arg5[%c0_20, %c0_21] : memref<128x1xf32, #tpu.memory_space<vmem>>, vector<128x1xf32>
    %33 = arith.subf %4, %22 : vector<128x1xf32>
    %34 = arith.mulf %33, %31 : vector<128x1xf32>
    %35 = arith.addf %32, %34 : vector<128x1xf32>
    %36 = vector.broadcast %31 : vector<128x1xf32> to vector<128x256xf32>
    %37 = arith.mulf %3, %36 : vector<128x256xf32>
    %38 = vector.broadcast %35 : vector<128x1xf32> to vector<128x256xf32>
    %39 = arith.addf %37, %38 : vector<128x256xf32>
    %40 = vector.extract_strided_slice %39 {offsets = [0, 0], sizes = [32, 256], strides = [1, 1]} : vector<128x256xf32> to vector<32x256xf32>
    %41 = arith.negf %40 : vector<32x256xf32>
    %42 = math.exp %41 : vector<32x256xf32>
    %cst_22 = arith.constant 1.000000e+00 : f32
    %43 = vector.broadcast %cst_22 : f32 to vector<32x256xf32>
    %44 = arith.addf %43, %42 : vector<32x256xf32>
    %45 = arith.divf %43, %44 : vector<32x256xf32>
    %46 = vector.extract_strided_slice %39 {offsets = [32, 0], sizes = [32, 256], strides = [1, 1]} : vector<128x256xf32> to vector<32x256xf32>
    %47 = arith.negf %46 : vector<32x256xf32>
    %48 = math.exp %47 : vector<32x256xf32>
    %cst_23 = arith.constant 1.000000e+00 : f32
    %49 = vector.broadcast %cst_23 : f32 to vector<32x256xf32>
    %50 = arith.addf %49, %48 : vector<32x256xf32>
    %51 = arith.divf %49, %50 : vector<32x256xf32>
    %52 = vector.extract_strided_slice %39 {offsets = [64, 0], sizes = [32, 256], strides = [1, 1]} : vector<128x256xf32> to vector<32x256xf32>
    %53 = math.tanh %52 : vector<32x256xf32>
    %54 = vector.extract_strided_slice %39 {offsets = [96, 0], sizes = [32, 256], strides = [1, 1]} : vector<128x256xf32> to vector<32x256xf32>
    %55 = arith.negf %54 : vector<32x256xf32>
    %56 = math.exp %55 : vector<32x256xf32>
    %cst_24 = arith.constant 1.000000e+00 : f32
    %57 = vector.broadcast %cst_24 : f32 to vector<32x256xf32>
    %58 = arith.addf %57, %56 : vector<32x256xf32>
    %59 = arith.divf %57, %58 : vector<32x256xf32>
    %c0_25 = arith.constant 0 : index
    %c0_26 = arith.constant 0 : index
    %c0_27 = arith.constant 0 : index
    %60 = vector.load %arg7[%c0_25, %c0_26, %c0_27] : memref<1x32x256xf32, #tpu.memory_space<vmem>>, vector<1x32x256xf32>
    %61 = vector.shape_cast %60 : vector<1x32x256xf32> to vector<32x256xf32>
    %62 = arith.mulf %51, %61 : vector<32x256xf32>
    %63 = arith.mulf %45, %53 : vector<32x256xf32>
    %64 = arith.addf %62, %63 : vector<32x256xf32>
    %65 = math.tanh %64 : vector<32x256xf32>
    %66 = arith.mulf %59, %65 : vector<32x256xf32>
    %c0_28 = arith.constant 0 : index
    %c0_29 = arith.constant 0 : index
    %c0_30 = arith.constant 0 : index
    %67 = vector.load %arg8[%c0_28, %c0_29, %c0_30] : memref<1x32x256xf32, #tpu.memory_space<vmem>>, vector<1x32x256xf32>
    %68 = vector.shape_cast %67 : vector<1x32x256xf32> to vector<32x256xf32>
    %69 = vector.shape_cast %66 : vector<32x256xf32> to vector<1x32x256xf32>
    tpu.vector_store %arg8[%c0_28, %c0_29, %c0_30], %69 {strides = array<i32>} : memref<1x32x256xf32, #tpu.memory_space<vmem>>, vector<1x32x256xf32>,
    %c0_31 = arith.constant 0 : index
    %c0_32 = arith.constant 0 : index
    %c0_33 = arith.constant 0 : index
    %70 = vector.load %arg9[%c0_31, %c0_32, %c0_33] : memref<1x32x256xf32, #tpu.memory_space<vmem>>, vector<1x32x256xf32>
    %71 = vector.shape_cast %70 : vector<1x32x256xf32> to vector<32x256xf32>
    %72 = vector.shape_cast %64 : vector<32x256xf32> to vector<1x32x256xf32>
    tpu.vector_store %arg9[%c0_31, %c0_32, %c0_33], %72 {strides = array<i32>} : memref<1x32x256xf32, #tpu.memory_space<vmem>>, vector<1x32x256xf32>,
    return
  }
  func.func @transform_0(%arg0: i32) -> (i32, i32, i32) {
    %c0_i32 = arith.constant 0 : i32
    %c0_i32_0 = arith.constant 0 : i32
    %c0_i32_1 = arith.constant 0 : i32
    return %arg0, %c0_i32, %c0_i32_0 : i32, i32, i32
  }
  func.func @transform_1(%arg0: i32) -> (i32, i32) {
    %c0_i32 = arith.constant 0 : i32
    %c0_i32_0 = arith.constant 0 : i32
    %c0_i32_1 = arith.constant 0 : i32
    return %c0_i32, %c0_i32_0 : i32, i32
  }
  func.func @transform_2(%arg0: i32) -> (i32, i32) {
    %c0_i32 = arith.constant 0 : i32
    %c0_i32_0 = arith.constant 0 : i32
    %c0_i32_1 = arith.constant 0 : i32
    return %c0_i32, %c0_i32_0 : i32, i32
  }
  func.func @transform_3(%arg0: i32) -> (i32, i32) {
    %c0_i32 = arith.constant 0 : i32
    %c0_i32_0 = arith.constant 0 : i32
    %c0_i32_1 = arith.constant 0 : i32
    return %c0_i32, %c0_i32_0 : i32, i32
  }
  func.func @transform_4(%arg0: i32) -> (i32, i32) {
    %c0_i32 = arith.constant 0 : i32
    %c0_i32_0 = arith.constant 0 : i32
    %c0_i32_1 = arith.constant 0 : i32
    return %c0_i32, %c0_i32_0 : i32, i32
  }
  func.func @transform_5(%arg0: i32) -> (i32, i32) {
    %c0_i32 = arith.constant 0 : i32
    %c0_i32_0 = arith.constant 0 : i32
    %c0_i32_1 = arith.constant 0 : i32
    return %c0_i32, %c0_i32_0 : i32, i32
  }
  func.func @transform_6(%arg0: i32) -> (i32, i32, i32) {
    %c0_i32 = arith.constant 0 : i32
    %c0_i32_0 = arith.constant 0 : i32
    %c0_i32_1 = arith.constant 0 : i32
    return %arg0, %c0_i32, %c0_i32_0 : i32, i32, i32
  }
  func.func @transform_7(%arg0: i32) -> (i32, i32, i32) {
    %c0_i32 = arith.constant 0 : i32
    %c0_i32_0 = arith.constant 0 : i32
    %c0_i32_1 = arith.constant 0 : i32
    return %arg0, %c0_i32, %c0_i32_0 : i32, i32, i32
  }
  func.func @transform_8(%arg0: i32) -> (i32, i32, i32) {
    %c0_i32 = arith.constant 0 : i32
    %c0_i32_0 = arith.constant 0 : i32
    %c0_i32_1 = arith.constant 0 : i32
    return %arg0, %c0_i32, %c0_i32_0 : i32, i32, i32
  }
}

</mosaic_0001>

<bundles_post_ra>
// kernel: tpu_custom_call.1
= control target key start
LH: loop header
LB: loop body
LE: loop exit
PB: predicated region body
PF: predicated region fallthrough
CT: control target
= control target key end

     0   :  { %s4552_s0 = inlined_call_operand.hbm [shape: bf16[2,384,256], index: 0, kind: input, shape index: {}]   ;;  %s4553_s1 = inlined_call_operand.vmem [shape: bf16[128,384], index: 1, kind: input, shape index: {}]   ;;  %s4554_s2 = inlined_call_operand.vmem [shape: f32[128,1], index: 2, kind: input, shape index: {}]   ;;  %s4555_s3 = inlined_call_operand.vmem [shape: f32[128,1], index: 3, kind: input, shape index: {}]   ;;  %s4556_s4 = inlined_call_operand.vmem [shape: f32[128,1], index: 4, kind: input, shape index: {}]   ;;  %s4557_s5 = inlined_call_operand.vmem [shape: f32[128,128], index: 5, kind: input, shape index: {}]   ;;  %s4558_s6 = inlined_call_operand.hbm [shape: f32[2,32,256], index: 6, kind: input, shape index: {}]   ;;  %s4559_s7 = inlined_call_operand.hbm [shape: f32[2,32,256], index: 7, kind: output, shape index: {0}]   ;;  %s4560_s8 = inlined_call_operand.hbm [shape: f32[2,32,256], index: 8, kind: output, shape index: {1}]  }
   0x1   :  { %4589 = sst [smem:[#allocation41_spill]] %s4552_s0 }
   0x2   :  { %14 = vsyncpa [#allocation3], 0 }
   0x3   :  { %16 = vsyncpa [#allocation3 + $0x1], 0 }
   0x4   :  { %17 = vsyncpa [#allocation6], 0 }
   0x5   :  { %19 = vsyncpa [#allocation6 + $0x1], 0 }
   0x6   :  { %20 = vsyncpa [#allocation4], 0 }
   0x7   :  { %22 = vsyncpa [#allocation4 + $0x1], 0 }
   0x8   :  { %23 = vsyncpa [#allocation9], 0 }
   0x9   :  { %25 = vsyncpa [#allocation9 + $0x1], 0  ;;  %s3349_s27 = smov 0   ;;  %s3351_s28 = smov 0  }
   0xa   :  { %s3353_s29 = smov 0   ;;  %s3355_s30 = smov 0  }
   0xb LB: > { %4590 = sst [smem:[#allocation14_spill]] %s3287_s29  ;;  %s3370_s9 = sadd.s32 4294967295, %s3291_s30   ;;  %s3291_s30 = sphi %s3355_s30, %s4656_s30   ;;  %s3287_s29 = sphi %s3353_s29, %s4653_s29   ;;  %s3283_s28 = sphi %s3351_s28, %s4655_s28   ;;  %s3279_s27 = sphi %s3349_s27, %s4654_s27  }
   0xc   : > { %s2391_s10 = sadd.s32 4294967294, %s3291_s30   ;;  %s3374_s11 = sadd.s32 1, %s3291_s30  }
   0xd   : > { %s38_s12 = sadd.s32 1, %s3287_s29  ;;  %s35_s13 = ssub.s32 %s3291_s30, %s3374_s11 }
   0xe   : > { %p45_p0 = scmp.ne.s32.totalorder %s3287_s29, %s3283_s28  ;;  %p36_p1 = scmp.eq.s32.totalorder %s35_s13, 0 }
   0xf   : > { %p46_p2 = scmp.eq.s32.totalorder %s3291_s30, 0  ;;  %p51_p3 = scmp.ne.s32.totalorder %s3283_s28, %s3279_s27 }
  0x10   : > { %p52_p4 = scmp.eq.s32.totalorder %s3370_s9, 0  ;;  %p206_p7 = scmp.eq.s32.totalorder %s3370_s9, 1 }
  0x11   : > { %s3386_s14 = scalar_select %p36_p1, %s3287_s29, %s38_s12  }
  0x12   : > { %p47_p5 = por %p46_p2, %p45_p0  ;;  %p3388_p6 = por %p52_p4, %p51_p3 }
  0x13   : > { %4591 = sst [smem:[#allocation15_spill]] %s3386_s14  ;;  %p212_p8 = scmp.eq.s32.totalorder %s2391_s10, 1 }
  0x14   : > { %s4592_s15 = scalar_select %p3388_p6, 1, 0 }
  0x15   : > { %p2822_p10 = scmp.lt.s32.totalorder %s3291_s30, 2  ;;  %p3395_p11 = por %p206_p7, %p45_p0 }
  0x16   : > { %p3399_p12 = por %p212_p8, %p51_p3  ;;  %s3404_s18 = sand.u32 1, %s3287_s29  }
  0x17   : > { %s4593_s16 = scalar_select %p3395_p11, 1, 0 }
  0x18   : > { %s4594_s17 = scalar_select %p3399_p12, 1, 0 }
  0x19   : > { %s2798_s19 = smul.u32 6144, %s3291_s30  ;;  %s4595_s0 = sld [smem:[#allocation41_spill]] }
  0x1a   : > { %s2797_s20 = smul.u32 384, %s3404_s18  ;;  %p3413_p13 = pnand %p2822_p10, %p47_p5 }
  0x1b   : > { %s274_s10 = scalar_lea.sflag [#allocation3], %s3404_s18 }
  0x1c   : > { %s277_s25 = scalar_lea.vmem [#allocation2], %s2797_s20  ;;  %p3131_p1 = pneg %p3413_p13 }
  0x1d   : > { %s284_s26 = sshll.u32 %s277_s25, 4  ;;  %s3417_s26 = int_to_ptr.vmem [resolvable:$true] %s284_s26 }
  0x1f   : > { %s3411_s23 = scalar_lea.hbm %s4595_s0, %s2798_s19  ;;  %s3134_s21 = scalar_lea.hbm %s4595_s0, 12288 }
  0x20   : > { %s3129_s12 = scalar_lea.hbm %s3411_s23, 6144  ;;  %p3135_p4 = scmp.lt.u32.totalorder %s3411_s23, %s4595_s0 }
  0x21   : > { %p3130_p0 = scmp.ne.s32.totalorder %s3411_s23, %s3129_s12  ;;  %p3136_p5 = scmp.lt.u32.totalorder %s3134_s21, %s3129_s12 }
  0x22   : > { %p3138_p8 = scmp.lt.u32.totalorder %s3129_s12, %s3411_s23 }
  0x23   : > { %p3132_p2 = pnand %p3131_p1, %p3130_p0  ;;  %p3137_p7 = por %p3136_p5, %p3135_p4 }
  0x25   : > { %p3133_p3 = pneg %p3132_p2  ;;  %p3139_p10 = por %p3138_p8, %p3137_p7 }
  0x27   : > { %p3140_p9 = pnand %p3139_p10, %p3133_p3 }
  0x29   : > { %3143 = shalt.err (!%p3140_p9)
}
  0x2a   : > { %s3144_s20 = scalar_lea.vmem %s3417_s26, 6144  ;;  %s3293_s25 = smov [#allocation2]  }
  0x2b   : > { %p3145_p0 = scmp.ne.s32.totalorder %s3417_s26, %s3144_s20  ;;  %s3149_s13 = sshll.u32 %s3293_s25, 4  ;;  %s3150_s13 = int_to_ptr.vmem [resolvable:$false] %s3149_s13 }
  0x2c   : > { %s3151_s14 = scalar_lea.vmem %s3150_s13, 12288  ;;  %p3152_p11 = scmp.lt.s32.totalorder %s3417_s26, %s3150_s13 }
  0x2d   : > { %p3147_p2 = pnand %p3145_p0, %p3131_p1  ;;  %p3153_p4 = scmp.lt.s32.totalorder %s3151_s14, %s3144_s20 }
  0x2f   : > { %p3148_p12 = pneg %p3147_p2  ;;  %p3154_p5 = por %p3153_p4, %p3152_p11 }
  0x31   : > { %p3155_p7 = pnand %p3154_p5, %p3148_p12 }
  0x33   : > { %3158 = shalt.err (!%p3155_p7)
}
  0x34   : > { %s3294_s12 = smov 128   ;;  %s3295_s19 = smov 8  }
  0x35   : > { %2811 = dma.hbm_to_vmem [thread:$0]  (!%p3413_p13), %s3411_s23, 6144, %s3417_s26, %s274_s10, %s3294_s12, %s3294_s12, %s3295_s19  }
  0x36   : > { %p2398_p9 = scmp.ge.s32.totalorder %s3291_s30, 1  ;;  %p313_p3 = scmp.lt.s32.totalorder %s3291_s30, 3 }
  0x37   : > { %s2395_s21 = sshll.u32 %s3404_s18, 6  ;;  %s2506_s20 = sshll.u32 %s3291_s30, 10 }
  0x38   : > { %p3450_p11 = pnand %p2398_p9, %p313_p3  ;;  %s298_s25 = scalar_lea.vmem [#allocation5], %s2395_s21 }
  0x39   : > { %s305_s13 = sshll.u32 %s298_s25, 4  ;;  %s3458_s29 = scalar_lea.hbm %s4558_s6, %s2506_s20  ;;  %s3460_s13 = int_to_ptr.vmem [resolvable:$true] %s305_s13 }
  0x3a   : > { %s295_s23 = scalar_lea.sflag [#allocation6], %s3404_s18  ;;  %s3159_s26 = scalar_lea.hbm %s3458_s29, 1024 }
  0x3b   : > { %p3160_p12 = scmp.ne.s32.totalorder %s3458_s29, %s3159_s26  ;;  %s3164_s19 = scalar_lea.hbm %s4558_s6, 2048 }
  0x3c   : > { %p3165_p0 = scmp.lt.u32.totalorder %s3458_s29, %s4558_s6  ;;  %p3166_p2 = scmp.lt.u32.totalorder %s3164_s19, %s3159_s26 }
  0x3d   : > { %p3162_p8 = pnand %p3160_p12, %p3131_p1  ;;  %p3168_p5 = scmp.lt.u32.totalorder %s3159_s26, %s3458_s29 }
  0x3e   : > { %p3167_p4 = por %p3166_p2, %p3165_p0 }
  0x3f   : > { %p3163_p10 = pneg %p3162_p8 }
  0x40   : > { %p3169_p7 = por %p3168_p5, %p3167_p4 }
  0x42   : > { %p3170_p9 = pnand %p3169_p7, %p3163_p10 }
  0x44   : > { %3173 = shalt.err (!%p3170_p9)
}
  0x45   : > { %s3174_s20 = scalar_lea.vmem %s3460_s13, 1024  ;;  %s3296_s25 = smov [#allocation5]  }
  0x46   : > { %p3175_p3 = scmp.ne.s32.totalorder %s3460_s13, %s3174_s20  ;;  %s3179_s14 = sshll.u32 %s3296_s25, 4  ;;  %s3180_s14 = int_to_ptr.vmem [resolvable:$false] %s3179_s14 }
  0x47   : > { %s3181_s10 = scalar_lea.vmem %s3180_s14, 2048  ;;  %p3182_p6 = scmp.lt.s32.totalorder %s3460_s13, %s3180_s14 }
  0x48   : > { %p3177_p12 = pnand %p3175_p3, %p3131_p1  ;;  %p3183_p0 = scmp.lt.s32.totalorder %s3181_s10, %s3174_s20 }
  0x4a   : > { %p3178_p8 = pneg %p3177_p12  ;;  %p3184_p2 = por %p3183_p0, %p3182_p6 }
  0x4c   : > { %p3185_p4 = pnand %p3184_p2, %p3178_p8 }
  0x4e   : > { %3188 = shalt.err (!%p3185_p4)
}
  0x4f   : > { %s3297_s26 = smov 256   ;;  %s3298_s12 = smov 16  }
  0x50   : > { %2814 = dma.hbm_to_vmem [thread:$0]  (!%p3413_p13), %s3458_s29, 1024, %s3460_s13, %s295_s23, %s3297_s26, %s3297_s26, %s3298_s12  }
  0x51   : > { %317 = sbr.rel (%p3450_p11) target bundleno = 1147 (0x47b), region = 48 }
  0x58   : > { %s3491_s19 = sand.u32 1, %s3283_s28   ;;  %p4598_p6 = scmp.ne.s32.totalorder %s4592_s15, 0 }
  0x59   : > { %s2799_s0 = smul.u32 384, %s3491_s19  ;;  %s320_s21 = scalar_lea.sflag [#allocation3], %s3491_s19 }
  0x5b   : > { %s3495_s20 = scalar_lea.vmem [#allocation2], %s2799_s0 }
  0x5c   : > { %3262 = dma.done.wait (%p4598_p6), %s320_s21, 6144  }
  0x5d   : > { %3264 = vsyncadd (%p4598_p6), %s320_s21, 4294961152  ;;  %s3502_s29 = sshll.u32 %s3491_s19, 6  ;;  %s329_s18 = scalar_lea.sflag [#allocation6], %s3491_s19 }
  0x5e   : > { %s3506_s24 = scalar_lea.vmem [#allocation5], %s3502_s29 }
  0x5f   : > { %3266 = dma.done.wait (%p4598_p6), %s329_s18, 1024  }
  0x60   : > { %3268 = vsyncadd (%p4598_p6), %s329_s18, 4294966272  ;;  %v3299_v0 = vmov 0   ;;  %v2865_v1 = vld [vmem:[%s3495_s20 + $0x4] ss:$8 sps:$4 sm:$0xff]   ;;  %v2867_v2 = vld [vmem:[%s3495_s20] ss:$8 sps:$4 sm:$0xff]  }
  0x61   : > { %989 = vmatprep.mubr.bf16.mxu1 %v3299_v0  ;;  %2863 = vset.pattern.permute.xlu1 %v3299_v0  ;;  %v2868_v3 = vld [vmem:[%s3495_s20 + $0x14] ss:$8 sps:$4 sm:$0xff]   ;;  %v2870_v4 = vld [vmem:[%s3495_s20 + $0x10] ss:$8 sps:$4 sm:$0xff]   ;;  %v2871_v5 = vld [vmem:[%s3495_s20 + $0x24] ss:$8 sps:$4 sm:$0xff]  }
  0x62   : > { %2864 = vset.pattern.permute.xlu0 %v3299_v0  ;;  %824 = vmatprep.subr.bf16.mxu0 %v2865_v1  ;;  %v2873_v6 = vld [vmem:[%s3495_s20 + $0x20] ss:$8 sps:$4 sm:$0xff]   ;;  %v2874_v7 = vld [vmem:[%s3495_s20 + $0x34] ss:$8 sps:$4 sm:$0xff]   ;;  %v2876_v8 = vld [vmem:[%s3495_s20 + $0x30] ss:$8 sps:$4 sm:$0xff]  }
  0x63   : > { %825 = vmatpush1.bf16.msra.mxu0 %v2867_v2  ;;  %v2877_v9 = vld [vmem:[%s3495_s20 + $0x44] ss:$8 sps:$4 sm:$0xff]   ;;  %v2879_v10 = vld [vmem:[%s3495_s20 + $0x40] ss:$8 sps:$4 sm:$0xff]   ;;  %v2880_v11 = vld [vmem:[%s3495_s20 + $0x54] ss:$8 sps:$4 sm:$0xff]  }
  0x64   : > { %826 = vmatprep.subr.bf16.mxu0 %v2868_v3  ;;  %v3527_v12 = vld [vmem:[%s3495_s20 + $0x104] ss:$8 sps:$4 sm:$0xff]   ;;  %v3530_v13 = vld [vmem:[%s3495_s20 + $0x100] ss:$8 sps:$4 sm:$0xff]   ;;  %v2882_v14 = vld [vmem:[%s3495_s20 + $0x50] ss:$8 sps:$4 sm:$0xff]  }
  0x65   : > { %2749 = vmatprep.subr.bf16.mxu1 %v3527_v12  ;;  %v2883_v15 = vld [vmem:[%s3495_s20 + $0x64] ss:$8 sps:$4 sm:$0xff]   ;;  %v3537_v16 = vld [vmem:[%s3495_s20 + $0x114] ss:$8 sps:$4 sm:$0xff]   ;;  %v3540_v17 = vld [vmem:[%s3495_s20 + $0x110] ss:$8 sps:$4 sm:$0xff]  }
  0x66   : > { %2757 = vmatpush1.bf16.msra.mxu1 %v3530_v13  ;;  %v2885_v18 = vld [vmem:[%s3495_s20 + $0x60] ss:$8 sps:$4 sm:$0xff]   ;;  %v2886_v19 = vld [vmem:[%s3495_s20 + $0x74] ss:$8 sps:$4 sm:$0xff]   ;;  %v3546_v20 = vld [vmem:[%s3495_s20 + $0x124] ss:$8 sps:$4 sm:$0xff]  }
  0x67   : > { %827 = vmatpush1.bf16.msra.mxu0 %v2870_v4  ;;  %2750 = vmatprep.subr.bf16.mxu1 %v3537_v16  ;;  %v3550_v21 = vld [vmem:[%s3495_s20 + $0x120] ss:$8 sps:$4 sm:$0xff]   ;;  %v3554_v22 = vld [vmem:[%s3495_s20 + $0x134] ss:$8 sps:$4 sm:$0xff]   ;;  %v2888_v23 = vld [vmem:[%s3495_s20 + $0x70] ss:$8 sps:$4 sm:$0xff]  }
  0x68   : > { %828 = vmatprep.subr.bf16.mxu0 %v2871_v5  ;;  %v2889_v24 = vld [vmem:[%s3495_s20 + $0x84] ss:$8 sps:$4 sm:$0xff]   ;;  %v3563_v26 = vld [vmem:[%s3495_s20 + $0x130] ss:$8 sps:$4 sm:$0xff]   ;;  %v2891_v28 = vld [vmem:[%s3495_s20 + $0x80] ss:$8 sps:$4 sm:$0xff]  }
  0x69   : > { %v2927_v25 = vld [vmem:[%s4553_s1 + $0x4] ss:$12 sps:$4 sm:$0xff]   ;;  %v2892_v29 = vld [vmem:[%s3495_s20 + $0x94] ss:$8 sps:$4 sm:$0xff]   ;;  %v3573_v30 = vld [vmem:[%s3495_s20 + $0x140] ss:$8 sps:$4 sm:$0xff]  }
  0x6a   : > { %2758 = vmatpush1.bf16.msra.mxu1 %v3540_v17  ;;  %856 = vmatprep.mubr.bf16.mxu0 %v2927_v25  ;;  %v3567_v27 = vld [vmem:[%s3495_s20 + $0x144] ss:$8 sps:$4 sm:$0xff]   ;;  %v3577_v31 = vld [vmem:[%s3495_s20 + $0x154] ss:$8 sps:$4 sm:$0xff]   ;;  %v2894_v32 = vld [vmem:[%s3495_s20 + $0x90] ss:$8 sps:$4 sm:$0xff]  }
  0x6b   : > { %829 = vmatpush1.bf16.msra.mxu0 %v2873_v6  ;;  %2751 = vmatprep.subr.bf16.mxu1 %v3546_v20  ;;  %v2895_v33 = vld [vmem:[%s3495_s20 + $0xa4] ss:$8 sps:$4 sm:$0xff]   ;;  %v3583_v34 = vld [vmem:[%s3495_s20 + $0x150] ss:$8 sps:$4 sm:$0xff]   ;;  %v2897_v36 = vld [vmem:[%s3495_s20 + $0xa0] ss:$8 sps:$4 sm:$0xff]  }
  0x6c   : > { %830 = vmatprep.subr.bf16.mxu0 %v2874_v7  ;;  %v3587_v35 = vld [vmem:[%s3495_s20 + $0x164] ss:$8 sps:$4 sm:$0xff]   ;;  %v2898_v37 = vld [vmem:[%s3495_s20 + $0xb4] ss:$8 sps:$4 sm:$0xff]   ;;  %v3593_v38 = vld [vmem:[%s3495_s20 + $0x160] ss:$8 sps:$4 sm:$0xff]  }
  0x6d   : > { %v3597_v39 = vld [vmem:[%s3495_s20 + $0x174] ss:$8 sps:$4 sm:$0xff]   ;;  %v2900_v40 = vld [vmem:[%s3495_s20 + $0xb0] ss:$8 sps:$4 sm:$0xff]   ;;  %v2901_v41 = vld [vmem:[%s3495_s20 + $0xc4] ss:$8 sps:$4 sm:$0xff]  }
  0x6e   : > { %2759 = vmatpush1.bf16.msra.mxu1 %v3550_v21  ;;  %v3603_v42 = vld [vmem:[%s3495_s20 + $0x170] ss:$8 sps:$4 sm:$0xff]   ;;  %v2905_v43 = vld [vmem:[%s3495_s20 + $0xc0] ss:$8 sps:$4 sm:$0xff]   ;;  %v2907_v45 = vld [vmem:[%s3495_s20 + $0xd4] ss:$8 sps:$4 sm:$0xff]  }
  0x6f   : > { %831 = vmatpush1.bf16.msra.mxu0 %v2876_v8  ;;  %2752 = vmatprep.subr.bf16.mxu1 %v3554_v22  ;;  %v2946_v44 = vld [vmem:[%s4553_s1 + $0x38] ss:$12 sps:$4 sm:$0xff]   ;;  %v2917_v48 = vld [vmem:[%s3495_s20 + $0xe0] ss:$8 sps:$4 sm:$0xff]   ;;  %v2950_v49 = vld [vmem:[%s4553_s1 + $0x50] ss:$12 sps:$4 sm:$0xff]  }
  0x70   : > { %832 = vmatprep.subr.bf16.mxu0 %v2877_v9  ;;  %v2911_v46 = vld [vmem:[%s3495_s20 + $0xd0] ss:$8 sps:$4 sm:$0xff]   ;;  %v2913_v47 = vld [vmem:[%s3495_s20 + $0xe4] ss:$8 sps:$4 sm:$0xff]   ;;  %v2919_v50 = vld [vmem:[%s3495_s20 + $0xf4] ss:$8 sps:$4 sm:$0xff]  }
  0x71   : > { %v2923_v51 = vld [vmem:[%s3495_s20 + $0xf0] ss:$8 sps:$4 sm:$0xff]   ;;  %v2925_v52 = vld [vmem:[%s4553_s1] ss:$12 sps:$4 sm:$0xff]   ;;  %v2934_v53 = vld [vmem:[%s4553_s1 + $0x1c] ss:$12 sps:$4 sm:$0xff]  }
  0x72   : > { %2760 = vmatpush1.bf16.msra.mxu1 %v3563_v26  ;;  %v2954_v54 = vld [vmem:[%s4553_s1 + $0x68] ss:$12 sps:$4 sm:$0xff]   ;;  %v2936_v55 = vld [vmem:[%s4553_s1 + $0x18] ss:$12 sps:$4 sm:$0xff]   ;;  %v2958_v57 = vld [vmem:[%s4553_s1 + $0x80] ss:$12 sps:$4 sm:$0xff]  }
  0x73   : > { %833 = vmatpush1.bf16.msra.mxu0 %v2879_v10  ;;  %2753 = vmatprep.subr.bf16.mxu1 %v3567_v27  ;;  %v2943_v56 = vld [vmem:[%s4553_s1 + $0x34] ss:$12 sps:$4 sm:$0xff]   ;;  %v2945_v58 = vld [vmem:[%s4553_s1 + $0x30] ss:$12 sps:$4 sm:$0xff]   ;;  %v2947_v59 = vld [vmem:[%s4553_s1 + $0x4c] ss:$12 sps:$4 sm:$0xff]  }
  0x74   : > { %834 = vmatprep.subr.bf16.mxu0 %v2880_v11  ;;  %v2962_v60 = vld [vmem:[%s4553_s1 + $0x98] ss:$12 sps:$4 sm:$0xff]   ;;  %v2949_v61 = vld [vmem:[%s4553_s1 + $0x48] ss:$12 sps:$4 sm:$0xff]   ;;  %v2966_v63 = vld [vmem:[%s4553_s1 + $0xb0] ss:$12 sps:$4 sm:$0xff]  }
  0x75   : > { %v2951_v62 = vld [vmem:[%s4553_s1 + $0x64] ss:$12 sps:$4 sm:$0xff]   ;;  %v2953_v1 = vld [vmem:[%s4553_s1 + $0x60] ss:$12 sps:$4 sm:$0xff]   ;;  %v2955_v2 = vld [vmem:[%s4553_s1 + $0x7c] ss:$12 sps:$4 sm:$0xff]  }
  0x76   : > { %2761 = vmatpush1.bf16.msra.mxu1 %v3573_v30  ;;  %v2957_v3 = vld [vmem:[%s4553_s1 + $0x78] ss:$12 sps:$4 sm:$0xff]   ;;  %v2959_v4 = vld [vmem:[%s4553_s1 + $0x94] ss:$12 sps:$4 sm:$0xff]   ;;  %v2961_v5 = vld [vmem:[%s4553_s1 + $0x90] ss:$12 sps:$4 sm:$0xff]  }
  0x77   : > { %835 = vmatpush1.bf16.msra.mxu0 %v2882_v14  ;;  %2754 = vmatprep.subr.bf16.mxu1 %v3577_v31  ;;  %v2963_v6 = vld [vmem:[%s4553_s1 + $0xac] ss:$12 sps:$4 sm:$0xff]   ;;  %v2965_v7 = vld [vmem:[%s4553_s1 + $0xa8] ss:$12 sps:$4 sm:$0xff]   ;;  %s4408_s26 = scalar_lea.vmem [#allocation8], %s3502_s29  ;;  %s4444_s12 = scalar_lea.vmem [#allocation7], %s3502_s29 }
  0x78   : > { %836 = vmatprep.subr.bf16.mxu0 %v2883_v15  ;;  %v2967_v8 = vld [vmem:[%s4553_s1 + $0x8] ss:$12 sps:$4 sm:$0xff]   ;;  %v2968_v9 = vld [vmem:[%s4553_s1 + $0x20] ss:$12 sps:$4 sm:$0xff]   ;;  %s2507_s0 = sshll.u32 %s3370_s9, 10  ;;  %s2234_s20 = scalar_lea.sflag [#allocation9], %s3491_s19 }
  0x79   : > { %s4457_s18 = scalar_lea.hbm %s4560_s8, %s2507_s0  ;;  %p4649_p1 = scmp.ne.s32.totalorder %s4593_s16, 0 }
  0x7a   : > { %2762 = vmatpush1.bf16.msra.mxu1 %v3583_v34  ;;  %s3300_s22 = smov [#allocation8]  }
  0x7b   : > { %837 = vmatpush1.bf16.msra.mxu0 %v2885_v18  ;;  %2755 = vmatprep.subr.bf16.mxu1 %v3587_v35  ;;  %s3193_s13 = sshll.u32 %s3300_s22, 4  ;;  %s3194_s13 = int_to_ptr.vmem [resolvable:$false] %s3193_s13 }
  0x7c   : > { %838 = vmatprep.subr.bf16.mxu0 %v2886_v19  ;;  %s3195_s23 = scalar_lea.vmem %s3194_s13, 2048 }
  0x7e   : > { %2763 = vmatpush1.bf16.msra.mxu1 %v3593_v38 }
  0x7f   : > { %839 = vmatpush1.bf16.msra.mxu0 %v2888_v23  ;;  %2756 = vmatprep.subr.bf16.mxu1 %v3597_v39 }
  0x80   : > { %840 = vmatprep.subr.bf16.mxu0 %v2889_v24 }
  0x82   : > { %2764 = vmatpush1.bf16.msra.mxu1 %v3603_v42 }
  0x83   : > { %841 = vmatpush1.bf16.msra.mxu0 %v2891_v28 }
  0x84   : > { %842 = vmatprep.subr.bf16.mxu0 %v2892_v29 }
  0x85   : > { %990 = vmatmul.mubr.bf16.vlgmr.msra.gmra.mrb[0].mxu1 %v2946_v44 }
  0x86   : > { %999 = vmatprep.mubr.bf16.mxu1 %v3299_v0 }
  0x87   : > { %843 = vmatpush1.bf16.msra.mxu0 %v2894_v32 }
  0x88   : > { %844 = vmatprep.subr.bf16.mxu0 %v2895_v33 }
  0x8b   : > { %845 = vmatpush1.bf16.msra.mxu0 %v2897_v36 }
  0x8c   : > { %846 = vmatprep.subr.bf16.mxu0 %v2898_v37 }
  0x8d   : > { %1000 = vmatmul.mubr.bf16.gmra.mrb[4].mxu1 %v2950_v49 }
  0x8e   : > { %1009 = vmatprep.mubr.bf16.mxu1 %v3299_v0 }
  0x8f   : > { %847 = vmatpush1.bf16.msra.mxu0 %v2900_v40 }
  0x90   : > { %848 = vmatprep.subr.bf16.mxu0 %v2901_v41 }
  0x93   : > { %849 = vmatpush1.bf16.msra.mxu0 %v2905_v43 }
  0x94   : > { %850 = vmatprep.subr.bf16.mxu0 %v2907_v45 }
  0x95   : > { %1010 = vmatmul.mubr.bf16.gmra.mrb[8].mxu1 %v2954_v54 }
  0x96   : > { %1019 = vmatprep.mubr.bf16.mxu1 %v3299_v0 }
  0x97   : > { %851 = vmatpush1.bf16.msra.mxu0 %v2911_v46 }
  0x98   : > { %852 = vmatprep.subr.bf16.mxu0 %v2913_v47 }
  0x9b   : > { %853 = vmatpush1.bf16.msra.mxu0 %v2917_v48 }
  0x9c   : > { %854 = vmatprep.subr.bf16.mxu0 %v2919_v50 }
  0x9d   : > { %1020 = vmatmul.mubr.bf16.gmra.mrb[12].mxu1 %v2958_v57 }
  0x9e   : > { %1029 = vmatprep.mubr.bf16.mxu1 %v3299_v0 }
  0x9f   : > { %855 = vmatpush1.bf16.msra.mxu0 %v2923_v51 }
  0xa0   : > { %937 = vmatprep.subr.bf16.mxu0 %v3527_v12 }
  0xa2   : > { %857 = vmatmul.mubr.bf16.vlgmr.msra.gmra.mrb[0].mxu0 %v2925_v52 }
  0xa3   : > { %866 = vmatprep.mubr.bf16.mxu0 %v2934_v53  ;;  %938 = vmatpush1.bf16.msra.mxu0 %v3530_v13 }
  0xa4   : > { %939 = vmatprep.subr.bf16.mxu0 %v3537_v16 }
  0xa5   : > { %1030 = vmatmul.mubr.bf16.gmra.mrb[16].mxu1 %v2962_v60 }
  0xa6   : > { %1039 = vmatprep.mubr.bf16.mxu1 %v3299_v0 }
  0xa7   : > { %940 = vmatpush1.bf16.msra.mxu0 %v3540_v17 }
  0xa8   : > { %941 = vmatprep.subr.bf16.mxu0 %v3546_v20 }
  0xaa   : > { %867 = vmatmul.mubr.bf16.gmra.mrb[4].mxu0 %v2936_v55 }
  0xab   : > { %876 = vmatprep.mubr.bf16.mxu0 %v2943_v56  ;;  %942 = vmatpush1.bf16.msra.mxu0 %v3550_v21 }
  0xac   : > { %943 = vmatprep.subr.bf16.mxu0 %v3554_v22 }
  0xad   : > { %1040 = vmatmul.mubr.bf16.gmra.mrb[20].mxu1 %v2966_v63 }
  0xaf   : > { %944 = vmatpush1.bf16.msra.mxu0 %v3563_v26 }
  0xb0   : > { %945 = vmatprep.subr.bf16.mxu0 %v3567_v27 }
  0xb2   : > { %877 = vmatmul.mubr.bf16.gmra.mrb[8].mxu0 %v2945_v58 }
  0xb3   : > { %886 = vmatprep.mubr.bf16.mxu0 %v2947_v59  ;;  %946 = vmatpush1.bf16.msra.mxu0 %v3573_v30 }
  0xb4   : > { %947 = vmatprep.subr.bf16.mxu0 %v3577_v31 }
  0xb7   : > { %948 = vmatpush1.bf16.msra.mxu0 %v3583_v34 }
  0xb8   : > { %949 = vmatprep.subr.bf16.mxu0 %v3587_v35 }
  0xba   : > { %887 = vmatmul.mubr.bf16.gmra.mrb[12].mxu0 %v2949_v61 }
  0xbb   : > { %896 = vmatprep.mubr.bf16.mxu0 %v2951_v62  ;;  %950 = vmatpush1.bf16.msra.mxu0 %v3593_v38 }
  0xbc   : > { %951 = vmatprep.subr.bf16.mxu0 %v3597_v39 }
  0xbf   : > { %952 = vmatpush1.bf16.msra.mxu0 %v3603_v42 }
  0xc2   : > { %897 = vmatmul.mubr.bf16.gmra.mrb[16].mxu0 %v2953_v1 }
  0xc3   : > { %906 = vmatprep.mubr.bf16.mxu0 %v2955_v2 }
  0xca   : > { %907 = vmatmul.mubr.bf16.gmra.mrb[20].mxu0 %v2957_v3 }
  0xcb   : > { %916 = vmatprep.mubr.bf16.mxu0 %v2959_v4 }
  0xd2   : > { %917 = vmatmul.mubr.bf16.gmra.mrb[24].mxu0 %v2961_v5 }
  0xd3   : > { %926 = vmatprep.mubr.bf16.mxu0 %v2963_v6 }
  0xda   : > { %927 = vmatmul.mubr.bf16.gmra.mrb[28].mxu0 %v2965_v7 }
  0xdb   : > { %969 = vmatprep.mubr.bf16.mxu0 %v3299_v0 }
  0xe2   : > { %970 = vmatmul.mubr.bf16.vlgmr.msra.gmra.mrb[0].mxu0 %v2967_v8 }
  0xe3   : > { %979 = vmatprep.mubr.bf16.mxu0 %v3299_v0 }
  0xea   : > { %980 = vmatmul.mubr.bf16.gmra.mrb[4].mxu0 %v2968_v9 }
 0x158   : > { %v991_v10 = vpop.f32.mrb[0].mxu1 }
 0x159   : > { %v993_v11 = vpop.f32.mrb[1].mxu1 }
 0x15a   : > { %v995_v12 = vpop.f32.mrb[2].mxu1 }
 0x15b   : > { %v997_v13 = vpop.f32.mrb[3].mxu1 }
 0x160   : > { %v1001_v14 = vpop.f32.mrb[4].mxu1 }
 0x161   : > { %v1003_v15 = vpop.f32.mrb[5].mxu1 }
 0x162   : > { %v1005_v16 = vpop.f32.mrb[6].mxu1 }
 0x163   : > { %v1007_v17 = vpop.f32.mrb[7].mxu1 }
 0x168   : > { %v1011_v18 = vpop.f32.mrb[8].mxu1 }
 0x169   : > { %v1013_v19 = vpop.f32.mrb[9].mxu1 }
 0x16a   : > { %v1015_v20 = vpop.f32.mrb[10].mxu1 }
 0x16b   : > { %v1017_v21 = vpop.f32.mrb[11].mxu1 }
 0x170   : > { %v1021_v22 = vpop.f32.mrb[12].mxu1 }
 0x171   : > { %v1023_v23 = vpop.f32.mrb[13].mxu1 }
 0x172   : > { %v1025_v0 = vpop.f32.mrb[14].mxu1 }
 0x173   : > { %v1027_v24 = vpop.f32.mrb[15].mxu1 }
 0x178   : > { %v1031_v30 = vpop.f32.mrb[16].mxu1 }
 0x179   : > { %v1033_v33 = vpop.f32.mrb[17].mxu1 }
 0x17a   : > { %v1035_v35 = vpop.f32.mrb[18].mxu1 }
 0x17b   : > { %v1037_v36 = vpop.f32.mrb[19].mxu1 }
 0x180   : > { %v1041_v42 = vpop.f32.mrb[20].mxu1 }
 0x181   : > { %v1043_v45 = vpop.f32.mrb[21].mxu1 }
 0x182   : > { %v1045_v47 = vpop.f32.mrb[22].mxu1 }
 0x183   : > { %v1047_v48 = vpop.f32.mrb[23].mxu1 }
 0x185   : > { %v878_v25 = vpop.f32.mrb[8].mxu0 }
 0x186   : > { %v3706_v26 = vadd.f32 %v991_v10, %v878_v25  ;;  %v880_v27 = vpop.f32.mrb[9].mxu0 }
 0x187   : > { %v3708_v28 = vadd.f32 %v993_v11, %v880_v27  ;;  %v882_v29 = vpop.f32.mrb[10].mxu0 }
 0x188   : > { %4599 = vst [vmem:[#allocation16_spill] sm:$0xff] %v3706_v26  ;;  %v3710_v31 = vadd.f32 %v995_v12, %v882_v29  ;;  %v884_v32 = vpop.f32.mrb[11].mxu0 }
 0x189   : > { %4600 = vst [vmem:[#allocation17_spill] sm:$0xff] %v3708_v28  ;;  %v3712_v34 = vadd.f32 %v997_v13, %v884_v32 }
 0x18b   : > { %4601 = vst [vmem:[#allocation18_spill] sm:$0xff] %v3712_v34 }
 0x18d   : > { %v888_v37 = vpop.f32.mrb[12].mxu0 }
 0x18e   : > { %v3714_v38 = vadd.f32 %v1001_v14, %v888_v37  ;;  %v890_v39 = vpop.f32.mrb[13].mxu0  ;;  %v1078_v37 = vadd.f32 %v3708_v28, %v3706_v26 }
 0x18f   : > { %v3716_v40 = vadd.f32 %v1003_v15, %v890_v39  ;;  %v892_v41 = vpop.f32.mrb[14].mxu0 }
 0x190   : > { %4602 = vst [vmem:[#allocation19_spill] sm:$0xff] %v3714_v38  ;;  %v3718_v43 = vadd.f32 %v1005_v16, %v892_v41  ;;  %v894_v44 = vpop.f32.mrb[15].mxu0 }
 0x191   : > { %4603 = vst [vmem:[#allocation20_spill] sm:$0xff] %v3716_v40  ;;  %v3720_v46 = vadd.f32 %v1007_v17, %v894_v44 }
 0x192   : > { %4604 = vst [vmem:[#allocation21_spill] sm:$0xff] %v3718_v43 }
 0x193   : > { %4605 = vst [vmem:[#allocation22_spill] sm:$0xff] %v3720_v46 }
 0x195   : > { %v898_v49 = vpop.f32.mrb[16].mxu0 }
 0x196   : > { %v3722_v50 = vadd.f32 %v1011_v18, %v898_v49  ;;  %v900_v51 = vpop.f32.mrb[17].mxu0  ;;  %v1084_v49 = vadd.f32 %v3716_v40, %v3714_v38 }
 0x197   : > { %v3724_v52 = vadd.f32 %v1013_v19, %v900_v51  ;;  %v902_v53 = vpop.f32.mrb[18].mxu0 }
 0x198   : > { %4606 = vst [vmem:[#allocation23_spill] sm:$0xff] %v3722_v50  ;;  %v3726_v54 = vadd.f32 %v1015_v20, %v902_v53  ;;  %v904_v55 = vpop.f32.mrb[19].mxu0 }
 0x199   : > { %4607 = vst [vmem:[#allocation24_spill] sm:$0xff] %v3724_v52  ;;  %v3728_v56 = vadd.f32 %v1017_v21, %v904_v55  ;;  %v1090_v53 = vadd.f32 %v3724_v52, %v3722_v50  ;;  %v1081_v55 = vadd.f32 %v3712_v34, %v3710_v31 }
 0x19a   : > { %4608 = vst [vmem:[#allocation25_spill] sm:$0xff] %v3726_v54 }
 0x19b   : > { %4609 = vst [vmem:[#allocation26_spill] sm:$0xff] %v3728_v56 }
 0x19d   : > { %v908_v57 = vpop.f32.mrb[20].mxu0 }
 0x19e   : > { %v3730_v58 = vadd.f32 %v1021_v22, %v908_v57  ;;  %v910_v59 = vpop.f32.mrb[21].mxu0 }
 0x19f   : > { %v3732_v60 = vadd.f32 %v1023_v23, %v910_v59  ;;  %v912_v61 = vpop.f32.mrb[22].mxu0  ;;  %v1087_v59 = vadd.f32 %v3720_v46, %v3718_v43 }
 0x1a0   : > { %4610 = vst [vmem:[#allocation27_spill] sm:$0xff] %v3730_v58  ;;  %v3734_v62 = vadd.f32 %v1025_v0, %v912_v61  ;;  %v914_v63 = vpop.f32.mrb[23].mxu0 }
 0x1a1   : > { %4611 = vst [vmem:[#allocation28_spill] sm:$0xff] %v3732_v60  ;;  %v3736_v1 = vadd.f32 %v1027_v24, %v914_v63  ;;  %v1096_v57 = vadd.f32 %v3732_v60, %v3730_v58  ;;  %v1093_v63 = vadd.f32 %v3728_v56, %v3726_v54 }
 0x1a2   : > { %4612 = vst [vmem:[#allocation29_spill] sm:$0xff] %v3734_v62 }
 0x1a3   : > { %4613 = vst [vmem:[#allocation30_spill] sm:$0xff] %v3736_v1 }
 0x1a5   : > { %v918_v2 = vpop.f32.mrb[24].mxu0 }
 0x1a6   : > { %v3738_v3 = vadd.f32 %v1031_v30, %v918_v2  ;;  %v920_v4 = vpop.f32.mrb[25].mxu0 }
 0x1a7   : > { %v3740_v5 = vadd.f32 %v1033_v33, %v920_v4  ;;  %v922_v6 = vpop.f32.mrb[26].mxu0  ;;  %v1099_v4 = vadd.f32 %v3736_v1, %v3734_v62 }
 0x1a8   : > { %4614 = vst [vmem:[#allocation31_spill] sm:$0xff] %v3738_v3  ;;  %v3742_v7 = vadd.f32 %v1035_v35, %v922_v6  ;;  %v924_v8 = vpop.f32.mrb[27].mxu0 }
 0x1a9   : > { %4615 = vst [vmem:[#allocation32_spill] sm:$0xff] %v3740_v5  ;;  %v3744_v9 = vadd.f32 %v1037_v36, %v924_v8  ;;  %v1102_v61 = vadd.f32 %v3740_v5, %v3738_v3 }
 0x1aa   : > { %4616 = vst [vmem:[#allocation33_spill] sm:$0xff] %v3742_v7 }
 0x1ab   : > { %4617 = vst [vmem:[#allocation34_spill] sm:$0xff] %v3744_v9  ;;  %v1105_v6 = vadd.f32 %v3744_v9, %v3742_v7 }
 0x1ad   : > { %v928_v10 = vpop.f32.mrb[28].mxu0 }
 0x1ae   : > { %v3746_v11 = vadd.f32 %v1041_v42, %v928_v10  ;;  %v930_v12 = vpop.f32.mrb[29].mxu0  ;;  %v1122_v10 = vmul.f32 %v3706_v26, %v3706_v26 }
 0x1af   : > { %v3748_v13 = vadd.f32 %v1043_v45, %v930_v12  ;;  %v932_v14 = vpop.f32.mrb[30].mxu0  ;;  %v1123_v12 = vmul.f32 %v3708_v28, %v3708_v28 }
 0x1b0   : > { %4618 = vst [vmem:[#allocation35_spill] sm:$0xff] %v3746_v11  ;;  %v3750_v15 = vadd.f32 %v1045_v47, %v932_v14  ;;  %v934_v16 = vpop.f32.mrb[31].mxu0 }
 0x1b1   : > { %4619 = vst [vmem:[#allocation36_spill] sm:$0xff] %v3748_v13  ;;  %v3752_v17 = vadd.f32 %v1047_v48, %v934_v16  ;;  %v1108_v2 = vadd.f32 %v3748_v13, %v3746_v11  ;;  %v1158_v14 = vadd.f32 %v1123_v12, %v1122_v10  ;;  %v1126_v16 = vmul.f32 %v3714_v38, %v3714_v38 }
 0x1b2   : > { %4620 = vst [vmem:[#allocation37_spill] sm:$0xff] %v3750_v15  ;;  %v1141_v10 = vmul.f32 %v3744_v9, %v3744_v9 }
 0x1b3   : > { %4621 = vst [vmem:[#allocation38_spill] sm:$0xff] %v3752_v17  ;;  %v1111_v8 = vadd.f32 %v3752_v17, %v3750_v15 }
 0x1b5   : > { %v3754_v18 = vpop.f32.mrb[0].mxu0 }
 0x1b6   : > { %v3756_v19 = vpop.f32.mrb[1].mxu0  ;;  %v1114_v20 = vmul.f32 %v3754_v18, %v3754_v18 }
 0x1b7   : > { %v3760_v21 = vpop.f32.mrb[2].mxu0  ;;  %v1066_v22 = vadd.f32 %v3756_v19, %v3754_v18  ;;  %v1115_v23 = vmul.f32 %v3756_v19, %v3756_v19 }
 0x1b8   : > { %v3766_v0 = vpop.f32.mrb[3].mxu0  ;;  %v1116_v24 = vmul.f32 %v3760_v21, %v3760_v21 }
 0x1b9   : > { %1067 = vadd.xlane.f32.xlu0 %v1066_v22  ;;  %v1069_v25 = vadd.f32 %v3766_v0, %v3760_v21  ;;  %v1146_v27 = vadd.f32 %v1115_v23, %v1114_v20  ;;  %v1117_v29 = vmul.f32 %v3766_v0, %v3766_v0  ;;  %v1127_v20 = vmul.f32 %v3716_v40, %v3716_v40 }
 0x1ba   : > { %v1124_v22 = vmul.f32 %v3710_v31, %v3710_v31  ;;  %v1125_v23 = vmul.f32 %v3712_v34, %v3712_v34 }
 0x1bb   : > { %v1149_v30 = vadd.f32 %v1117_v29, %v1116_v24  ;;  %v1164_v24 = vadd.f32 %v1127_v20, %v1126_v16  ;;  %v1145_v16 = vmul.f32 %v3752_v17, %v3752_v17 }
 0x1bc   : > { %v1161_v29 = vadd.f32 %v1125_v23, %v1124_v22  ;;  %v3875_v22 = vld [vmem:[%s4554_s2] sm:$0xff]  ;;  %v3880_v23 = vld [vmem:[%s4554_s2 + $0x8] sm:$0xff] }
 0x1bd   : > { %1070 = vadd.xlane.f32.xlu0 %v1069_v25  ;;  %v3774_v32 = vpop.f32.mrb[4].mxu0  ;;  %v1130_v25 = vmul.f32 %v3722_v50, %v3722_v50  ;;  %v1275_v40 = vmul.f32 %v3880_v23, %v3880_v23 }
 0x1be   : > { %4622 = vst [vmem:[#allocation39_spill] sm:$0xff] %v3774_v32  ;;  %v3776_v33 = vpop.f32.mrb[5].mxu0  ;;  %v1118_v35 = vmul.f32 %v3774_v32, %v3774_v32 }
 0x1bf   : > { %4623 = vst [vmem:[#allocation40_spill] sm:$0xff] %v3776_v33  ;;  %v3780_v36 = vpop.f32.mrb[6].mxu0  ;;  %v1072_v39 = vadd.f32 %v3776_v33, %v3774_v32  ;;  %v1119_v41 = vmul.f32 %v3776_v33, %v3776_v33 }
 0x1c0   : > { %v3788_v42 = vpop.f32.mrb[7].mxu0  ;;  %v1120_v44 = vmul.f32 %v3780_v36, %v3780_v36 }
 0x1c1   : > { %v1121_v45 = vmul.f32 %v3788_v42, %v3788_v42  ;;  %1079 = vadd.xlane.f32.xlu0 %v1078_v37  ;;  %1073 = vadd.xlane.f32.xlu1 %v1072_v39  ;;  %v1075_v47 = vadd.f32 %v3788_v42, %v3780_v36  ;;  %v1152_v48 = vadd.f32 %v1119_v41, %v1118_v35 }
 0x1c2   : > { %v1128_v35 = vmul.f32 %v3718_v43, %v3718_v43  ;;  %v1134_v37 = vmul.f32 %v3730_v58, %v3730_v58  ;;  %v1135_v39 = vmul.f32 %v3732_v60, %v3732_v60  ;;  %v1129_v41 = vmul.f32 %v3720_v46, %v3720_v46 }
 0x1c3   : > { %v1155_v51 = vadd.f32 %v1121_v45, %v1120_v44  ;;  %v1132_v44 = vmul.f32 %v3726_v54, %v3726_v54  ;;  %v1133_v45 = vmul.f32 %v3728_v56, %v3728_v56  ;;  %v1291_v43 = vmul.f32 256.0, %v1275_v40 }
 0x1c5   : > { %1085 = vadd.xlane.f32.xlu0 %v1084_v49  ;;  %1076 = vadd.xlane.f32.xlu1 %v1075_v47  ;;  %v1176_v47 = vadd.f32 %v1135_v39, %v1134_v37  ;;  %v1138_v49 = vmul.f32 %v3738_v3, %v3738_v3  ;;  %v3893_v37 = vld [vmem:[%s4554_s2 + $0x10] sm:$0xff]  ;;  %v3898_v39 = vld [vmem:[%s4554_s2 + $0x18] sm:$0xff] }
 0x1c9   : > { %1091 = vadd.xlane.f32.xlu0 %v1090_v53  ;;  %1082 = vadd.xlane.f32.xlu1 %v1081_v55  ;;  %v1173_v53 = vadd.f32 %v1133_v45, %v1132_v44  ;;  %v1136_v55 = vmul.f32 %v3734_v62, %v3734_v62 }
 0x1cd   : > { %1097 = vadd.xlane.f32.xlu0 %v1096_v57  ;;  %1088 = vadd.xlane.f32.xlu1 %v1087_v59  ;;  %v1142_v59 = vmul.f32 %v3746_v11, %v3746_v11 }
 0x1d1   : > { %1103 = vadd.xlane.f32.xlu0 %v1102_v61  ;;  %1094 = vadd.xlane.f32.xlu1 %v1093_v63  ;;  %v1143_v61 = vmul.f32 %v3748_v13, %v3748_v13  ;;  %v1137_v63 = vmul.f32 %v3736_v1, %v3736_v1 }
 0x1d5   : > { %1109 = vadd.xlane.f32.xlu0 %v1108_v2  ;;  %1100 = vadd.xlane.f32.xlu1 %v1099_v4  ;;  %v3861_v2 = vld [vmem:[%s4557_s5] sm:$0xff]  ;;  %v1188_v4 = vadd.f32 %v1143_v61, %v1142_v59 }
 0x1d6   : > { %2605 = vmatprep.mubr.f32.mxu1 %v3861_v2 }
 0x1d9   : > { %1147 = vadd.xlane.f32.xlu0 %v1146_v27  ;;  %1106 = vadd.xlane.f32.xlu1 %v1105_v6  ;;  %v1131_v27 = vmul.f32 %v3724_v52, %v3724_v52  ;;  %v1179_v6 = vadd.f32 %v1137_v63, %v1136_v55 }
 0x1dd   : > { %1153 = vadd.xlane.f32.xlu0 %v1152_v48  ;;  %1112 = vadd.xlane.f32.xlu1 %v1111_v8  ;;  %v1167_v48 = vadd.f32 %v1129_v41, %v1128_v35  ;;  %v1140_v8 = vmul.f32 %v3742_v7, %v3742_v7  ;;  %v1274_v7 = vmul.f32 %v3875_v22, %v3875_v22 }
 0x1df   : > { %v1185_v12 = vadd.f32 %v1141_v10, %v1140_v8  ;;  %v1290_v26 = vmul.f32 256.0, %v1274_v7 }
 0x1e1   : > { %1159 = vadd.xlane.f32.xlu0 %v1158_v14  ;;  %1150 = vadd.xlane.f32.xlu1 %v1149_v30  ;;  %v1170_v30 = vadd.f32 %v1131_v27, %v1130_v25  ;;  %v1144_v14 = vmul.f32 %v3750_v15, %v3750_v15  ;;  %v1194_v25 = vmul.f32 256.0, %v3875_v22  ;;  %v1195_v27 = vmul.f32 256.0, %v3880_v23 }
 0x1e3   : > { %v1191_v20 = vadd.f32 %v1145_v16, %v1144_v14 }
 0x1e5   : > { %1165 = vadd.xlane.f32.xlu0 %v1164_v24  ;;  %1156 = vadd.xlane.f32.xlu1 %v1155_v51  ;;  %v1139_v51 = vmul.f32 %v3740_v5, %v3740_v5 }
 0x1e7   : > { %v1182_v57 = vadd.f32 %v1139_v51, %v1138_v49  ;;  %v3909_v49 = vld [vmem:[%s4554_s2 + $0x20] sm:$0xff]  ;;  %v3914_v51 = vld [vmem:[%s4554_s2 + $0x28] sm:$0xff] }
 0x1e8   : > { %v1199_v63 = vmul.f32 256.0, %v3914_v51  ;;  %v1231_v7 = vmul.f32 2.0, %v3914_v51  ;;  %v1279_v40 = vmul.f32 %v3914_v51, %v3914_v51 }
 0x1e9   : > { %1171 = vadd.xlane.f32.xlu0 %v1170_v30  ;;  %1162 = vadd.xlane.f32.xlu1 %v1161_v29 }
 0x1ed   : > { %1177 = vadd.xlane.f32.xlu0 %v1176_v47  ;;  %1168 = vadd.xlane.f32.xlu1 %v1167_v48  ;;  %v1196_v47 = vmul.f32 256.0, %v3893_v37  ;;  %v1197_v48 = vmul.f32 256.0, %v3898_v39 }
 0x1f1   : > { %1183 = vadd.xlane.f32.xlu0 %v1182_v57  ;;  %1174 = vadd.xlane.f32.xlu1 %v1173_v53  ;;  %v1198_v57 = vmul.f32 256.0, %v3909_v49 }
 0x1f5   : > { %1189 = vadd.xlane.f32.xlu0 %v1188_v4  ;;  %1180 = vadd.xlane.f32.xlu1 %v1179_v6  ;;  %v3927_v4 = vld [vmem:[%s4554_s2 + $0x30] sm:$0xff]  ;;  %v3932_v6 = vld [vmem:[%s4554_s2 + $0x38] sm:$0xff] }
 0x1f6   : > { %v1200_v16 = vmul.f32 256.0, %v3927_v4 }
 0x1f9   : > { %1186 = vadd.xlane.f32.xlu1 %v1185_v12 }
 0x1fd   : > { %1192 = vadd.xlane.f32.xlu1 %v1191_v20 }
 0x246   : > { %v3882_v24 = vpop.xlane.xlu0 %1067 }
 0x247   : > { %v1210_v35 = vadd.f32 %v1194_v25, %v3882_v24  ;;  %v1201_v25 = vmul.f32 256.0, %v3932_v6 }
 0x24a   : > { %v3886_v29 = vpop.xlane.xlu0 %1070 }
 0x24b   : > { %v1211_v30 = vadd.f32 %v1195_v27, %v3886_v29  ;;  %v3945_v27 = vld [vmem:[%s4554_s2 + $0x40] sm:$0xff] }
 0x24d   : > { %v2685_v41 = vpack.c.bf16 %v1211_v30, %v1210_v35  ;;  %v3950_v35 = vld [vmem:[%s4554_s2 + $0x48] sm:$0xff] }
 0x24e   : > { %v3900_v44 = vpop.xlane.xlu0 %1079  ;;  %v3902_v45 = vpop.xlane.xlu1 %1073 }
 0x24f   : > { %2686 = vmatprep.subr.bf16.mxu1 %v2685_v41  ;;  %v1212_v59 = vadd.f32 %v1196_v47, %v3902_v45  ;;  %v1214_v14 = vadd.f32 %v1198_v57, %v3900_v44  ;;  %v1202_v57 = vmul.f32 256.0, %v3945_v27 }
 0x250   : > { %2688 = vmatpush3.bf16.msra.mxu1 %v2685_v41 }
 0x252   : > { %v3916_v53 = vpop.xlane.xlu0 %1085  ;;  %v3918_v55 = vpop.xlane.xlu1 %1076 }
 0x253   : > { %v1213_v61 = vadd.f32 %v1197_v48, %v3918_v55  ;;  %v1216_v48 = vadd.f32 %v1200_v16, %v3916_v53 }
 0x255   : > { %v2689_v8 = vpack.c.bf16 %v1213_v61, %v1212_v59  ;;  %v1203_v61 = vmul.f32 256.0, %v3950_v35 }
 0x256   : > { %v3934_v10 = vpop.xlane.xlu0 %1091  ;;  %v3936_v12 = vpop.xlane.xlu1 %1082 }
 0x257   : > { %v1215_v20 = vadd.f32 %v1199_v63, %v3936_v12  ;;  %2690 = vmatprep.subr.bf16.mxu1 %v2689_v8  ;;  %v3963_v63 = vld [vmem:[%s4554_s2 + $0x50] sm:$0xff] }
 0x258   : > { %2692 = vmatpush3.bf16.msra.mxu1 %v2689_v8  ;;  %v3968_v8 = vld [vmem:[%s4554_s2 + $0x58] sm:$0xff]  ;;  %v1204_v13 = vmul.f32 256.0, %v3963_v63 }
 0x259   : > { %v2693_v30 = vpack.c.bf16 %v1215_v20, %v1214_v14  ;;  %v1205_v5 = vmul.f32 256.0, %v3968_v8 }
 0x25a   : > { %v3952_v41 = vpop.xlane.xlu0 %1097  ;;  %v3954_v47 = vpop.xlane.xlu1 %1088 }
 0x25b   : > { %v1217_v59 = vadd.f32 %v1201_v25, %v3954_v47  ;;  %2694 = vmatprep.subr.bf16.mxu1 %v2693_v30  ;;  %v1218_v25 = vadd.f32 %v1202_v57, %v3934_v10 }
 0x25c   : > { %2696 = vmatpush3.bf16.msra.mxu1 %v2693_v30  ;;  %v3981_v30 = vld [vmem:[%s4554_s2 + $0x60] sm:$0xff] }
 0x25d   : > { %v2697_v14 = vpack.c.bf16 %v1217_v59, %v1216_v48  ;;  %v3986_v48 = vld [vmem:[%s4554_s2 + $0x68] sm:$0xff]  ;;  %v1206_v60 = vmul.f32 256.0, %v3981_v30 }
 0x25e   : > { %v3970_v16 = vpop.xlane.xlu0 %1103  ;;  %v3972_v20 = vpop.xlane.xlu1 %1094  ;;  %v1207_v52 = vmul.f32 256.0, %v3986_v48 }
 0x25f   : > { %v1219_v11 = vadd.f32 %v1203_v61, %v3972_v20  ;;  %2698 = vmatprep.subr.bf16.mxu1 %v2697_v14  ;;  %v1220_v61 = vadd.f32 %v1204_v13, %v3952_v41  ;;  %v1226_v13 = vmul.f32 2.0, %v3875_v22 }
 0x260   : > { %2700 = vmatpush3.bf16.msra.mxu1 %v2697_v14  ;;  %v3999_v14 = vld [vmem:[%s4554_s2 + $0x70] sm:$0xff] }
 0x261   : > { %v2701_v59 = vpack.c.bf16 %v1219_v11, %v1218_v25  ;;  %v4004_v11 = vld [vmem:[%s4554_s2 + $0x78] sm:$0xff]  ;;  %v1208_v15 = vmul.f32 256.0, %v3999_v14 }
 0x262   : > { %v3988_v57 = vpop.xlane.xlu0 %1109  ;;  %v3990_v3 = vpop.xlane.xlu1 %1100 }
 0x263   : > { %v1221_v58 = vadd.f32 %v1205_v5, %v3990_v3  ;;  %2702 = vmatprep.subr.bf16.mxu1 %v2701_v59  ;;  %v1222_v5 = vadd.f32 %v1206_v60, %v3970_v16  ;;  %v1242_v60 = vmul.f32 %v1226_v13, %v3882_v24  ;;  %v1224_v62 = vadd.f32 %v1208_v15, %v3988_v57 }
 0x264   : > { %2704 = vmatpush3.bf16.msra.mxu1 %v2701_v59  ;;  %v1209_v59 = vmul.f32 256.0, %v4004_v11 }
 0x265   : > { %v2705_v25 = vpack.c.bf16 %v1221_v58, %v1220_v61  ;;  %v1227_v58 = vmul.f32 2.0, %v3880_v23 }
 0x266   : > { %v1148_v50 = vpop.xlane.xlu0 %1147  ;;  %v4007_v17 = vpop.xlane.xlu1 %1106 }
 0x267   : > { %v1223_v9 = vadd.f32 %v1207_v52, %v4007_v17  ;;  %2706 = vmatprep.subr.bf16.mxu1 %v2705_v25  ;;  %v1228_v52 = vmul.f32 2.0, %v3893_v37  ;;  %v1243_v46 = vmul.f32 %v1227_v58, %v3886_v29  ;;  %v1258_v24 = vadd.f32 %v1242_v60, %v1148_v50 }
 0x268   : > { %2708 = vmatpush3.bf16.msra.mxu1 %v2705_v25  ;;  %v1229_v25 = vmul.f32 2.0, %v3898_v39  ;;  %v1232_v58 = vmul.f32 2.0, %v3927_v4 }
 0x269   : > { %v2709_v61 = vpack.c.bf16 %v1223_v9, %v1222_v5  ;;  %v1276_v9 = vmul.f32 %v3893_v37, %v3893_v37  ;;  %v1277_v5 = vmul.f32 %v3898_v39, %v3898_v39  ;;  %v1244_v54 = vmul.f32 %v1228_v52, %v3902_v45  ;;  %v4046_v45 = vld [vmem:[%s4557_s5 + $0x10] sm:$0xff] }
 0x26a   : > { %v1154_v38 = vpop.xlane.xlu0 %1153  ;;  %v4018_v1 = vpop.xlane.xlu1 %1112  ;;  %v1245_v50 = vmul.f32 %v1229_v25, %v3918_v55 }
 0x26b   : > { %v1225_v28 = vadd.f32 %v1209_v59, %v4018_v1  ;;  %2710 = vmatprep.subr.bf16.mxu1 %v2709_v61  ;;  %v1230_v59 = vmul.f32 2.0, %v3909_v49  ;;  %v1292_v32 = vmul.f32 256.0, %v1276_v9  ;;  %v1293_v34 = vmul.f32 256.0, %v1277_v5 }
 0x26c   : > { %2712 = vmatpush3.bf16.msra.mxu1 %v2709_v61  ;;  %v1278_v61 = vmul.f32 %v3909_v49, %v3909_v49  ;;  %v1260_v29 = vadd.f32 %v1244_v54, %v1154_v38  ;;  %v1233_v5 = vmul.f32 2.0, %v3932_v6  ;;  %v1280_v38 = vmul.f32 %v3927_v4, %v3927_v4  ;;  %v4058_v54 = vld [vmem:[%s4557_s5 + $0x18] sm:$0xff] }
 0x26d   : > { %v2713_v13 = vpack.c.bf16 %v1225_v28, %v1224_v62  ;;  %v4038_v28 = vld [vmem:[%s4557_s5 + $0x8] sm:$0xff]  ;;  %v1306_v62 = vadd.f32 %v1290_v26, %v1258_v24  ;;  %v1246_v9 = vmul.f32 %v1230_v59, %v3900_v44  ;;  %v1247_v44 = vmul.f32 %v1231_v7, %v3936_v12  ;;  %v4066_v59 = vld [vmem:[%s4557_s5 + $0x20] sm:$0xff] }
 0x26e   : > { %v1160_v56 = vpop.xlane.xlu0 %1159  ;;  %v1151_v15 = vpop.xlane.xlu1 %1150  ;;  %v1294_v26 = vmul.f32 256.0, %v1278_v61  ;;  %v1308_v25 = vadd.f32 %v1292_v32, %v1260_v29  ;;  %v1234_v61 = vmul.f32 2.0, %v3945_v27  ;;  %v1282_v32 = vmul.f32 %v3945_v27, %v3945_v27  ;;  %v4078_v7 = vld [vmem:[%s4557_s5 + $0x28] sm:$0xff] }
 0x26f   : > { %v1259_v33 = vadd.f32 %v1243_v46, %v1151_v15  ;;  %2714 = vmatprep.subr.bf16.mxu1 %v2713_v13  ;;  %v1262_v24 = vadd.f32 %v1246_v9, %v1160_v56  ;;  %v1249_v29 = vmul.f32 %v1233_v5, %v3954_v47  ;;  %v1284_v5 = vmul.f32 %v3963_v63, %v3963_v63 }
 0x270   : > { %2716 = vmatpush3.bf16.msra.mxu1 %v2713_v13 }
 0x271   : > { %v1307_v46 = vadd.f32 %v1291_v43, %v1259_v33  ;;  %v1295_v43 = vmul.f32 256.0, %v1279_v40  ;;  %v1281_v33 = vmul.f32 %v3932_v6, %v3932_v6 }
 0x272   : > { %v1166_v60 = vpop.xlane.xlu0 %1165  ;;  %v1157_v52 = vpop.xlane.xlu1 %1156 }
 0x273   : > { %v1261_v13 = vadd.f32 %v1245_v50, %v1157_v52  ;;  %2606 = vmatmul.mubr.f32.vlgmr.msra.gmra.mrb[24].mxu1 %v4038_v28  ;;  %v2717_v55 = vpack.c.bf16 %v1307_v46, %v1306_v62  ;;  %v1248_v62 = vmul.f32 %v1232_v58, %v3916_v53  ;;  %v1235_v46 = vmul.f32 2.0, %v3950_v35 }
 0x274   : > { %2608 = vmatprep.mubr.f32.mxu1 %v4046_v45  ;;  %v1297_v12 = vmul.f32 256.0, %v1281_v33  ;;  %v1283_v53 = vmul.f32 %v3950_v35, %v3950_v35  ;;  %v1310_v58 = vadd.f32 %v1294_v26, %v1262_v24 }
 0x275   : > { %v1309_v15 = vadd.f32 %v1293_v34, %v1261_v13  ;;  %2718 = vmatprep.subr.bf16.mxu1 %v2717_v55  ;;  %v1296_v34 = vmul.f32 256.0, %v1280_v38  ;;  %v1264_v9 = vadd.f32 %v1248_v62, %v1166_v60  ;;  %v1236_v38 = vmul.f32 2.0, %v3963_v63 }
 0x276   : > { %v1172_v40 = vpop.xlane.xlu0 %1171  ;;  %2720 = vmatpush3.bf16.msra.mxu1 %v2717_v55  ;;  %v1163_v50 = vpop.xlane.xlu1 %1162  ;;  %v4086_v55 = vld [vmem:[%s4557_s5 + $0x30] sm:$0xff]  ;;  %v1298_v60 = vmul.f32 256.0, %v1282_v32  ;;  %v1299_v26 = vmul.f32 256.0, %v1283_v53  ;;  %v1251_v24 = vmul.f32 %v1235_v46, %v3972_v20  ;;  %v1238_v32 = vmul.f32 2.0, %v3981_v30 }
 0x277   : > { %v1263_v52 = vadd.f32 %v1247_v44, %v1163_v50  ;;  %2609 = vmatmul.mubr.f32.gmra.mrb[26].mxu1 %v4058_v54  ;;  %v2721_v56 = vpack.c.bf16 %v1309_v15, %v1308_v25  ;;  %v1250_v25 = vmul.f32 %v1234_v61, %v3934_v10  ;;  %v1237_v15 = vmul.f32 2.0, %v3968_v8 }
 0x278   : > { %2611 = vmatprep.mubr.f32.mxu1 %v4066_v59  ;;  %v1285_v10 = vmul.f32 %v3968_v8, %v3968_v8  ;;  %v1312_v61 = vadd.f32 %v1296_v34, %v1264_v9  ;;  %v1286_v46 = vmul.f32 %v3981_v30, %v3981_v30  ;;  %v4118_v9 = vld [vmem:[%s4557_s5 + $0x48] sm:$0xff] }
 0x279   : > { %v1311_v13 = vadd.f32 %v1295_v43, %v1263_v52  ;;  %2722 = vmatprep.subr.bf16.mxu1 %v2721_v56  ;;  %v4098_v43 = vld [vmem:[%s4557_s5 + $0x38] sm:$0xff]  ;;  %v1266_v62 = vadd.f32 %v1250_v25, %v1172_v40  ;;  %v1300_v40 = vmul.f32 256.0, %v1284_v5  ;;  %v1240_v5 = vmul.f32 2.0, %v3999_v14 }
 0x27a   : > { %v1178_v33 = vpop.xlane.xlu0 %1177  ;;  %2724 = vmatpush3.bf16.msra.mxu1 %v2721_v56  ;;  %v1169_v44 = vpop.xlane.xlu1 %1168  ;;  %v4106_v56 = vld [vmem:[%s4557_s5 + $0x40] sm:$0xff] }
 0x27b   : > { %v1265_v50 = vadd.f32 %v1249_v29, %v1169_v44  ;;  %2612 = vmatmul.mubr.f32.gmra.mrb[28].mxu1 %v4078_v7  ;;  %v2725_v47 = vpack.c.bf16 %v1311_v13, %v1310_v58  ;;  %v1252_v29 = vmul.f32 %v1236_v38, %v3952_v41  ;;  %v1239_v58 = vmul.f32 2.0, %v3986_v48 }
 0x27c   : > { %2614 = vmatprep.mubr.f32.mxu1 %v4086_v55  ;;  %v1287_v41 = vmul.f32 %v3986_v48, %v3986_v48  ;;  %v1253_v38 = vmul.f32 %v1237_v15, %v3990_v3  ;;  %v1314_v44 = vadd.f32 %v1298_v60, %v1266_v62  ;;  %v1302_v15 = vmul.f32 256.0, %v1286_v46 }
 0x27d   : > { %v1313_v52 = vadd.f32 %v1297_v12, %v1265_v50  ;;  %2726 = vmatprep.subr.bf16.mxu1 %v2725_v47  ;;  %v1301_v12 = vmul.f32 256.0, %v1285_v10  ;;  %v1268_v25 = vadd.f32 %v1252_v29, %v1178_v33  ;;  %v1288_v33 = vmul.f32 %v3999_v14, %v3999_v14 }
 0x27e   : > { %2728 = vmatpush3.bf16.msra.mxu1 %v2725_v47  ;;  %v1175_v53 = vpop.xlane.xlu1 %1174  ;;  %v1184_v34 = vpop.xlane.xlu0 %1183  ;;  %v1332_v47 = vld [vmem:[%s4557_s5 + $0x50] sm:$0xff]  ;;  %v1303_v60 = vmul.f32 256.0, %v1287_v41  ;;  %v1289_v62 = vmul.f32 %v4004_v11, %v4004_v11  ;;  %v1256_v41 = vmul.f32 %v1240_v5, %v3988_v57 }
 0x27f   : > { %v1267_v13 = vadd.f32 %v1251_v24, %v1175_v53  ;;  %2615 = vmatmul.mubr.f32.gmra.mrb[30].mxu1 %v4098_v43  ;;  %v2729_v20 = vpack.c.bf16 %v1313_v52, %v1312_v61  ;;  %v1254_v24 = vmul.f32 %v1238_v32, %v3970_v16  ;;  %v1241_v61 = vmul.f32 2.0, %v4004_v11  ;;  %v1336_v57 = vld [vmem:[%s4557_s5 + $0x70] sm:$0xff] }
 0x280   : > { %2617 = vmatprep.mubr.f32.mxu1 %v4106_v56  ;;  %v1255_v16 = vmul.f32 %v1239_v58, %v4007_v17  ;;  %v1316_v32 = vadd.f32 %v1300_v40, %v1268_v25  ;;  %v1335_v17 = vld [vmem:[%s4557_s5 + $0x68] sm:$0xff] }
 0x281   : > { %v1315_v50 = vadd.f32 %v1299_v26, %v1267_v13  ;;  %2730 = vmatprep.subr.bf16.mxu1 %v2729_v20  ;;  %v1333_v26 = vld [vmem:[%s4557_s5 + $0x58] sm:$0xff]  ;;  %v1270_v53 = vadd.f32 %v1254_v24, %v1184_v34  ;;  %v1334_v13 = vld [vmem:[%s4557_s5 + $0x60] sm:$0xff]  ;;  %v1257_v58 = vmul.f32 %v1241_v61, %v4018_v1 }
 0x282   : > { %2732 = vmatpush3.bf16.msra.mxu1 %v2729_v20  ;;  %v1181_v10 = vpop.xlane.xlu1 %1180  ;;  %v1190_v20 = vpop.xlane.xlu0 %1189 }
 0x283   : > { %v1269_v52 = vadd.f32 %v1253_v38, %v1181_v10  ;;  %2618 = vmatmul.mubr.f32.gmra.mrb[32].mxu1 %v4118_v9  ;;  %v2733_v3 = vpack.c.bf16 %v1315_v50, %v1314_v44  ;;  %v1304_v50 = vmul.f32 256.0, %v1288_v33  ;;  %v1305_v10 = vmul.f32 256.0, %v1289_v62 }
 0x284   : > { %2620 = vmatprep.mubr.f32.mxu1 %v1332_v47  ;;  %v1318_v40 = vadd.f32 %v1302_v15, %v1270_v53  ;;  %v1272_v34 = vadd.f32 %v1256_v41, %v1190_v20 }
 0x285   : > { %v1317_v29 = vadd.f32 %v1301_v12, %v1269_v52  ;;  %2734 = vmatprep.subr.bf16.mxu1 %v2733_v3  ;;  %v1337_v52 = vld [vmem:[%s4557_s5 + $0x78] sm:$0xff] }
 0x286   : > { %2736 = vmatpush3.bf16.msra.mxu1 %v2733_v3  ;;  %v1187_v46 = vpop.xlane.xlu1 %1186  ;;  %v1320_v3 = vadd.f32 %v1304_v50, %v1272_v34 }
 0x287   : > { %v1271_v38 = vadd.f32 %v1255_v16, %v1187_v46  ;;  %2621 = vmatmul.mubr.f32.gmra.mrb[34].mxu1 %v1333_v26  ;;  %v2737_v44 = vpack.c.bf16 %v1317_v29, %v1316_v32 }
 0x288   : > { %2623 = vmatprep.mubr.f32.mxu1 %v1334_v13 }
 0x289   : > { %v1319_v12 = vadd.f32 %v1303_v60, %v1271_v38  ;;  %2738 = vmatprep.subr.bf16.mxu1 %v2737_v44 }
 0x28a   : > { %2740 = vmatpush3.bf16.msra.mxu1 %v2737_v44  ;;  %v1193_v25 = vpop.xlane.xlu1 %1192 }
 0x28b   : > { %v1273_v5 = vadd.f32 %v1257_v58, %v1193_v25  ;;  %2624 = vmatmul.mubr.f32.gmra.mrb[36].mxu1 %v1335_v17  ;;  %v2741_v24 = vpack.c.bf16 %v1319_v12, %v1318_v40 }
 0x28c   : > { %2626 = vmatprep.mubr.f32.mxu1 %v1336_v57 }
 0x28d   : > { %v1321_v1 = vadd.f32 %v1305_v10, %v1273_v5  ;;  %2742 = vmatprep.subr.bf16.mxu1 %v2741_v24 }
 0x28e   : > { %2744 = vmatpush3.bf16.msra.mxu1 %v2741_v24 }
 0x28f   : > { %2627 = vmatmul.mubr.f32.gmra.mrb[38].mxu1 %v1337_v52  ;;  %v2745_v61 = vpack.c.bf16 %v1321_v1, %v1320_v3 }
 0x290   : > { %2661 = vmatprep.mubr.f32.mxu1 %v3861_v2 }
 0x291   : > { %2746 = vmatprep.subr.bf16.mxu1 %v2745_v61 }
 0x292   : > { %2748 = vmatpush3.bf16.msra.mxu1 %v2745_v61 }
 0x295   : > { %2662 = vmatmul.mubr.f32.vlgmr.msra.gmra.mrb[40].mxu1 %v4038_v28 }
 0x296   : > { %2664 = vmatprep.mubr.f32.mxu1 %v4046_v45 }
 0x299   : > { %2665 = vmatmul.mubr.f32.gmra.mrb[42].mxu1 %v4058_v54 }
 0x29a   : > { %2667 = vmatprep.mubr.f32.mxu1 %v4066_v59 }
 0x29d   : > { %2668 = vmatmul.mubr.f32.gmra.mrb[44].mxu1 %v4078_v7 }
 0x29e   : > { %2670 = vmatprep.mubr.f32.mxu1 %v4086_v55 }
 0x2a1   : > { %2671 = vmatmul.mubr.f32.gmra.mrb[46].mxu1 %v4098_v43 }
 0x2a2   : > { %2673 = vmatprep.mubr.f32.mxu1 %v4106_v56 }
 0x2a5   : > { %2674 = vmatmul.mubr.f32.gmra.mrb[48].mxu1 %v4118_v9 }
 0x2a6   : > { %2676 = vmatprep.mubr.f32.mxu1 %v1332_v47 }
 0x2a9   : > { %2677 = vmatmul.mubr.f32.gmra.mrb[50].mxu1 %v1333_v26 }
 0x2aa   : > { %2679 = vmatprep.mubr.f32.mxu1 %v1334_v13 }
 0x2ad   : > { %2680 = vmatmul.mubr.f32.gmra.mrb[52].mxu1 %v1335_v17 }
 0x2ae   : > { %2682 = vmatprep.mubr.f32.mxu1 %v1336_v57 }
 0x2b1   : > { %2683 = vmatmul.mubr.f32.gmra.mrb[54].mxu1 %v1337_v52 }
 0x346   : > { %v4162_v2 = vpop.f32.mrb[24].mxu1 }
 0x347   : > { %v4164_v28 = vpop.f32.mrb[25].mxu1  ;;  %v1629_v16 = vmul.f32 %v4162_v2, %v4162_v2 }
 0x348   : > { %v1628_v32 = vmul.f32 %v4164_v28, %v4164_v28 }
 0x34a   : > { %v4166_v45 = vpop.f32.mrb[26].mxu1 }
 0x34b   : > { %v4168_v54 = vpop.f32.mrb[27].mxu1  ;;  %v1631_v46 = vmul.f32 %v4166_v45, %v4166_v45 }
 0x34c   : > { %v1630_v38 = vmul.f32 %v4168_v54, %v4168_v54 }
 0x34e   : > { %v4170_v59 = vpop.f32.mrb[28].mxu1 }
 0x34f   : > { %v4172_v7 = vpop.f32.mrb[29].mxu1  ;;  %v1633_v40 = vmul.f32 %v4170_v59, %v4170_v59 }
 0x350   : > { %v1632_v12 = vmul.f32 %v4172_v7, %v4172_v7 }
 0x352   : > { %v4174_v55 = vpop.f32.mrb[30].mxu1 }
 0x353   : > { %v4176_v43 = vpop.f32.mrb[31].mxu1  ;;  %v1635_v3 = vmul.f32 %v4174_v55, %v4174_v55 }
 0x354   : > { %v1634_v61 = vmul.f32 %v4176_v43, %v4176_v43 }
 0x356   : > { %v4178_v56 = vpop.f32.mrb[32].mxu1 }
 0x357   : > { %v4180_v9 = vpop.f32.mrb[33].mxu1 }
 0x35a   : > { %v4182_v47 = vpop.f32.mrb[34].mxu1 }
 0x35b   : > { %v4184_v15 = vpop.f32.mrb[35].mxu1 }
 0x35e   : > { %v4186_v33 = vpop.f32.mrb[36].mxu1 }
 0x35f   : > { %v4188_v60 = vpop.f32.mrb[37].mxu1 }
 0x362   : > { %v4190_v26 = vpop.f32.mrb[38].mxu1 }
 0x363   : > { %v4192_v62 = vpop.f32.mrb[39].mxu1 }
 0x368   : > { %v2663_v53 = vpop.f32.mrb[40].mxu1 }
 0x369   : > { %v1645_v29 = vsub.f32 %v2663_v53, %v1629_v16  ;;  %v1549_v13 = vpop.f32.mrb[41].mxu1 }
 0x36a   : > { %v1644_v20 = vsub.f32 %v1549_v13, %v1628_v32  ;;  %v1661_v13 = vld [vmem:[%s4555_s3 + $0x8] sm:$0xff] }
 0x36b   : > { %v1677_v41 = vadd.f32 1e-05, %v1645_v29 }
 0x36c   : > { %v1676_v44 = vadd.f32 1e-05, %v1644_v20  ;;  %v2666_v50 = vpop.f32.mrb[42].mxu1 }
 0x36d   : > { %2969 = vrsqrt.f32 %v1677_v41  ;;  %v1647_v10 = vsub.f32 %v2666_v50, %v1631_v46  ;;  %v1559_v17 = vpop.f32.mrb[43].mxu1  ;;  %v1660_v46 = vld [vmem:[%s4555_s3] sm:$0xff] }
 0x36e   : > { %2971 = vrsqrt.f32 %v1676_v44  ;;  %v1646_v58 = vsub.f32 %v1559_v17, %v1630_v38  ;;  %v1637_v38 = vmul.f32 %v4178_v56, %v4178_v56  ;;  %v1636_v17 = vmul.f32 %v4180_v9, %v4180_v9 }
 0x36f   : > { %v1679_v34 = vadd.f32 1e-05, %v1647_v10  ;;  %v1741_v10 = vsub.f32 %v3880_v23, %v4162_v2  ;;  %v1725_v23 = vld [vmem:[%s4556_s4 + $0x8] sm:$0xff] }
 0x370   : > { %v1678_v57 = vadd.f32 1e-05, %v1646_v58  ;;  %v2669_v25 = vpop.f32.mrb[44].mxu1 }
 0x371   : > { %2973 = vrsqrt.f32 %v1679_v34  ;;  %v1649_v5 = vsub.f32 %v2669_v25, %v1633_v40  ;;  %v1569_v24 = vpop.f32.mrb[45].mxu1 }
 0x372   : > { %2975 = vrsqrt.f32 %v1678_v57  ;;  %v1648_v52 = vsub.f32 %v1569_v24, %v1632_v12  ;;  %v1740_v12 = vsub.f32 %v3875_v22, %v4164_v28  ;;  %v1663_v24 = vld [vmem:[%s4555_s3 + $0x18] sm:$0xff]  ;;  %v1662_v22 = vld [vmem:[%s4555_s3 + $0x10] sm:$0xff] }
 0x373   : > { %v1681_v1 = vadd.f32 1e-05, %v1649_v5 }
 0x374   : > { %v1680_v16 = vadd.f32 1e-05, %v1648_v52  ;;  %v2672_v32 = vpop.f32.mrb[46].mxu1 }
 0x375   : > { %2977 = vrsqrt.f32 %v1681_v1  ;;  %v1651_v53 = vsub.f32 %v2672_v32, %v1635_v3  ;;  %v1579_v29 = vpop.f32.mrb[47].mxu1  ;;  %v1743_v3 = vsub.f32 %v3898_v39, %v4166_v45  ;;  %v1639_v1 = vmul.f32 %v4182_v47, %v4182_v47 }
 0x376   : > { %2979 = vrsqrt.f32 %v1680_v16  ;;  %v1650_v20 = vsub.f32 %v1579_v29, %v1634_v61 }
 0x377   : > { %v2970_v41 = vpop.eup %2969  ;;  %v1683_v44 = vadd.f32 1e-05, %v1651_v53  ;;  %v1638_v53 = vmul.f32 %v4184_v15, %v4184_v15 }
 0x378   : > { %v2972_v50 = vpop.eup %2971  ;;  %v1682_v58 = vadd.f32 1e-05, %v1650_v20  ;;  %v2675_v40 = vpop.f32.mrb[48].mxu1  ;;  %v1709_v34 = vmul.f32 %v2970_v41, %v1661_v13  ;;  %v1742_v41 = vsub.f32 %v3893_v37, %v4168_v54  ;;  %v1664_v37 = vld [vmem:[%s4555_s3 + $0x20] sm:$0xff] }
 0x379   : > { %2981 = vrsqrt.f32 %v1683_v44  ;;  %v1653_v57 = vsub.f32 %v2675_v40, %v1637_v38  ;;  %v1589_v25 = vpop.f32.mrb[49].mxu1  ;;  %v1708_v5 = vmul.f32 %v2972_v50, %v1660_v46  ;;  %v1727_v44 = vld [vmem:[%s4556_s4 + $0x18] sm:$0xff]  ;;  %v1665_v50 = vld [vmem:[%s4555_s3 + $0x28] sm:$0xff]  ;;  %v1641_v40 = vmul.f32 %v4186_v33, %v4186_v33 }
 0x37a   : > { %2983 = vrsqrt.f32 %v1682_v58  ;;  %v1652_v2 = vsub.f32 %v1589_v25, %v1636_v17  ;;  %1795 = vperm.xlu1 %2863, %v1709_v34   ;;  %v1757_v52 = vmul.f32 %v1741_v10, %v1709_v34  ;;  %v1745_v58 = vsub.f32 %v3914_v51, %v4170_v59 }
 0x37b   : > { %v2974_v28 = vpop.eup %2973  ;;  %v1685_v61 = vadd.f32 1e-05, %v1653_v57  ;;  %1790 = vperm.xlu0 %2864, %v1708_v5   ;;  %v1756_v16 = vmul.f32 %v1740_v12, %v1708_v5  ;;  %v1640_v25 = vmul.f32 %v4188_v60, %v4188_v60 }
 0x37c   : > { %v2976_v32 = vpop.eup %2975  ;;  %v1684_v29 = vadd.f32 1e-05, %v1652_v2  ;;  %v2678_v13 = vpop.f32.mrb[50].mxu1  ;;  %v1711_v20 = vmul.f32 %v2974_v28, %v1663_v24  ;;  %v1773_v46 = vadd.f32 %v1757_v52, %v1725_v23  ;;  %v1744_v52 = vsub.f32 %v3909_v49, %v4172_v7  ;;  %v1729_v28 = vld [vmem:[%s4556_s4 + $0x28] sm:$0xff] }
 0x37d   : > { %2985 = vrsqrt.f32 %v1685_v61  ;;  %v1655_v38 = vsub.f32 %v2678_v13, %v1639_v1  ;;  %v1599_v39 = vpop.f32.mrb[51].mxu1  ;;  %v1710_v45 = vmul.f32 %v2976_v32, %v1662_v22  ;;  %v1724_v22 = vld [vmem:[%s4556_s4] sm:$0xff]  ;;  %v1747_v61 = vsub.f32 %v3932_v6, %v4174_v55  ;;  %v1666_v32 = vld [vmem:[%s4555_s3 + $0x30] sm:$0xff] }
 0x37e   : > { %2987 = vrsqrt.f32 %v1684_v29  ;;  %v1654_v10 = vsub.f32 %v1599_v39, %v1638_v53  ;;  %1805 = vperm.xlu1 %2863, %v1711_v20   ;;  %v1759_v17 = vmul.f32 %v1743_v3, %v1711_v20  ;;  %v1667_v3 = vld [vmem:[%s4555_s3 + $0x38] sm:$0xff]  ;;  %v1643_v29 = vmul.f32 %v4190_v26, %v4190_v26 }
 0x37f   : > { %v2978_v54 = vpop.eup %2977  ;;  %v1687_v34 = vadd.f32 1e-05, %v1655_v38  ;;  %1907 = vperm.xlu0 %2864, %v1773_v46   ;;  %v4254_v12 = vmul.f32 %v1742_v41, %v1710_v45  ;;  %v1642_v13 = vmul.f32 %v4192_v62, %v4192_v62  ;;  %v1772_v38 = vadd.f32 %v1756_v16, %v1724_v22 }
 0x380   : > { %v2980_v57 = vpop.eup %2979  ;;  %v1686_v5 = vadd.f32 1e-05, %v1654_v10  ;;  %v2681_v24 = vpop.f32.mrb[52].mxu1  ;;  %v1775_v23 = vadd.f32 %v1759_v17, %v1727_v44  ;;  %v1713_v2 = vmul.f32 %v2978_v54, %v1665_v50  ;;  %v1746_v44 = vsub.f32 %v3927_v4, %v4176_v43  ;;  %v1731_v17 = vld [vmem:[%s4556_s4 + $0x38] sm:$0xff]  ;;  %v1668_v4 = vld [vmem:[%s4555_s3 + $0x40] sm:$0xff] }
 0x381   : > { %2989 = vrsqrt.f32 %v1687_v34  ;;  %v1657_v51 = vsub.f32 %v2681_v24, %v1641_v40  ;;  %v1609_v59 = vpop.f32.mrb[53].mxu1  ;;  %v1712_v1 = vmul.f32 %v2980_v57, %v1664_v37  ;;  %v1669_v37 = vld [vmem:[%s4555_s3 + $0x48] sm:$0xff] }
 0x382   : > { %2991 = vrsqrt.f32 %v1686_v5  ;;  %v1656_v49 = vsub.f32 %v1609_v59, %v1640_v25  ;;  %1800 = vperm.xlu1 %2863, %v1710_v45   ;;  %v1761_v7 = vmul.f32 %v1745_v58, %v1713_v2  ;;  %v1749_v25 = vsub.f32 %v3950_v35, %v4178_v56 }
 0x383   : > { %v2982_v53 = vpop.eup %2981  ;;  %v1689_v20 = vadd.f32 1e-05, %v1657_v51  ;;  %1917 = vperm.xlu0 %2864, %v1775_v23   ;;  %v4278_v46 = vmul.f32 %v1744_v52, %v1712_v1  ;;  %v1748_v52 = vsub.f32 %v3945_v27, %v4180_v9  ;;  %v1671_v51 = vld [vmem:[%s4555_s3 + $0x58] sm:$0xff]  ;;  %v1751_v27 = vsub.f32 %v3968_v8, %v4182_v47 }
 0x384   : > { %v2984_v6 = vpop.eup %2983  ;;  %v1688_v55 = vadd.f32 1e-05, %v1656_v49  ;;  %v2684_v41 = vpop.f32.mrb[54].mxu1  ;;  %v1777_v39 = vadd.f32 %v1761_v7, %v1729_v28  ;;  %v4280_v45 = vmul.f32 %v2982_v53, %v1667_v3  ;;  %v1670_v28 = vld [vmem:[%s4555_s3 + $0x50] sm:$0xff]  ;;  %v1673_v49 = vld [vmem:[%s4555_s3 + $0x68] sm:$0xff]  ;;  %v1672_v53 = vld [vmem:[%s4555_s3 + $0x60] sm:$0xff] }
 0x385   : > { %2993 = vrsqrt.f32 %v1689_v20  ;;  %v1659_v50 = vsub.f32 %v2684_v41, %v1643_v29  ;;  %v1619_v10 = vpop.f32.mrb[55].mxu1  ;;  %v4290_v54 = vmul.f32 %v2984_v6, %v1666_v32  ;;  %v1752_v20 = vsub.f32 %v3981_v30, %v4188_v60 }
 0x386   : > { %2995 = vrsqrt.f32 %v1688_v55  ;;  %v1658_v16 = vsub.f32 %v1619_v10, %v1642_v13  ;;  %1902 = vperm.xlu1 %2863, %v1772_v38   ;;  %v1763_v58 = vmul.f32 %v1747_v61, %v4280_v45  ;;  %v1750_v61 = vsub.f32 %v3963_v63, %v4184_v15  ;;  %v1733_v55 = vld [vmem:[%s4556_s4 + $0x48] sm:$0xff] }
 0x387   : > { %v2986_v43 = vpop.eup %2985  ;;  %v1691_v40 = vadd.f32 1e-05, %v1659_v50  ;;  %1927 = vperm.xlu0 %2864, %v1777_v39   ;;  %v4297_v34 = vmul.f32 %v1746_v44, %v4290_v54  ;;  %v1753_v63 = vsub.f32 %v3986_v48, %v4186_v33  ;;  %v1674_v48 = vld [vmem:[%s4555_s3 + $0x70] sm:$0xff]  ;;  %v1755_v30 = vsub.f32 %v4004_v11, %v4190_v26  ;;  %v1735_v11 = vld [vmem:[%s4556_s4 + $0x58] sm:$0xff] }
 0x388   : > { %v2988_v57 = vpop.eup %2987  ;;  %v1690_v5 = vadd.f32 1e-05, %v1658_v16  ;;  %v1779_v24 = vadd.f32 %v1763_v58, %v1731_v17  ;;  %v1717_v23 = vmul.f32 %v2986_v43, %v1669_v37  ;;  %v1754_v39 = vsub.f32 %v3999_v14, %v4192_v62  ;;  %v1728_v37 = vld [vmem:[%s4556_s4 + $0x20] sm:$0xff]  ;;  %v1730_v62 = vld [vmem:[%s4556_s4 + $0x30] sm:$0xff] }
 0x389   : > { %2997 = vrsqrt.f32 %v1691_v40  ;;  %v1716_v59 = vmul.f32 %v2988_v57, %v1668_v4  ;;  %v1776_v14 = vadd.f32 %v4278_v46, %v1728_v37  ;;  %v1739_v46 = vld [vmem:[%s4556_s4 + $0x78] sm:$0xff]  ;;  %v1732_v4 = vld [vmem:[%s4556_s4 + $0x40] sm:$0xff]  ;;  %v1734_v40 = vld [vmem:[%s4556_s4 + $0x50] sm:$0xff] }
 0x38a   : > { %2999 = vrsqrt.f32 %v1690_v5  ;;  %1815 = vperm.xlu1 %2863, %v1713_v2   ;;  %v1765_v22 = vmul.f32 %v1749_v25, %v1717_v23  ;;  %v1726_v2 = vld [vmem:[%s4556_s4 + $0x10] sm:$0xff]  ;;  %v1736_v57 = vld [vmem:[%s4556_s4 + $0x60] sm:$0xff] }
 0x38b   : > { %v2990_v35 = vpop.eup %2989  ;;  %1937 = vperm.xlu0 %2864, %v1779_v24   ;;  %v1764_v56 = vmul.f32 %v1748_v52, %v1716_v59  ;;  %v1774_v15 = vadd.f32 %v4254_v12, %v1726_v2  ;;  %v1738_v5 = vld [vmem:[%s4556_s4 + $0x70] sm:$0xff] }
 0x38c   : > { %v2992_v3 = vpop.eup %2991  ;;  %v1719_v9 = vmul.f32 %v2990_v35, %v1671_v51  ;;  %v1781_v44 = vadd.f32 %v1765_v22, %v1733_v55 }
 0x38d   : > { %v1718_v7 = vmul.f32 %v2992_v3, %v1670_v28  ;;  %v1780_v43 = vadd.f32 %v1764_v56, %v1732_v4 }
 0x38e   : > { %1810 = vperm.xlu1 %2863, %v1712_v1   ;;  %v1767_v32 = vmul.f32 %v1751_v27, %v1719_v9  ;;  %v1675_v1 = vld [vmem:[%s4555_s3 + $0x78] sm:$0xff] }
 0x38f   : > { %v2994_v8 = vpop.eup %2993  ;;  %1835 = vperm.xlu0 %2864, %v1717_v23   ;;  %v1766_v47 = vmul.f32 %v1750_v61, %v1718_v7 }
 0x390   : > { %v2996_v29 = vpop.eup %2995  ;;  %v1721_v13 = vmul.f32 %v2994_v8, %v1673_v49  ;;  %v1783_v26 = vadd.f32 %v1767_v32, %v1735_v11 }
 0x391   : > { %v1720_v6 = vmul.f32 %v2996_v29, %v1672_v53 }
 0x392   : > { %1912 = vperm.xlu1 %2863, %v1774_v15   ;;  %v1769_v41 = vmul.f32 %v1753_v63, %v1721_v13 }
 0x393   : > { %v2998_v33 = vpop.eup %2997  ;;  %1845 = vperm.xlu0 %2864, %v1719_v9   ;;  %v1768_v12 = vmul.f32 %v1752_v20, %v1720_v6  ;;  %v4624_v20 = vld [vmem:[#allocation18_spill] sm:$0xff] }
 0x394   : > { %v3000_v38 = vpop.eup %2999  ;;  %v1723_v60 = vmul.f32 %v2998_v33, %v1675_v1 }
 0x395   : > { %v1722_v50 = vmul.f32 %v3000_v38, %v1674_v48  ;;  %v1784_v25 = vadd.f32 %v1768_v12, %v1736_v57  ;;  %v4630_v57 = vld [vmem:[#allocation22_spill] sm:$0xff] }
 0x396   : > { %1825 = vperm.xlu1 %2863, %v4280_v45   ;;  %v1771_v10 = vmul.f32 %v1755_v30, %v1723_v60  ;;  %v1778_v45 = vadd.f32 %v4297_v34, %v1730_v62  ;;  %v1782_v34 = vadd.f32 %v1766_v47, %v1734_v40  ;;  %v4629_v40 = vld [vmem:[#allocation21_spill] sm:$0xff] }
 0x397   : > { %1947 = vperm.xlu0 %2864, %v1781_v44   ;;  %v1770_v17 = vmul.f32 %v1754_v39, %v1722_v50  ;;  %v4626_v44 = vld [vmem:[#allocation40_spill] sm:$0xff] }
 0x398   : > { %v1787_v58 = vadd.f32 %v1771_v10, %v1739_v46  ;;  %v4628_v46 = vld [vmem:[#allocation26_spill] sm:$0xff] }
 0x399   : > { %v1786_v24 = vadd.f32 %v1770_v17, %v1738_v5 }
 0x39a   : > { %1820 = vperm.xlu1 %2863, %v4290_v54   ;;  %v1737_v54 = vld [vmem:[%s4556_s4 + $0x68] sm:$0xff] }
 0x39b   : > { %1855 = vperm.xlu0 %2864, %v1721_v13   ;;  %v1785_v16 = vadd.f32 %v1769_v41, %v1737_v54  ;;  %v4627_v54 = vld [vmem:[#allocation25_spill] sm:$0xff] }
 0x39e   : > { %1922 = vperm.xlu1 %2863, %v1776_v14  }
 0x39f   : > { %1957 = vperm.xlu0 %2864, %v1783_v26  }
 0x3a2   : > { %1932 = vperm.xlu1 %2863, %v1778_v45  }
 0x3a3   : > { %1865 = vperm.xlu0 %2864, %v1723_v60   ;;  %v4625_v60 = vld [vmem:[#allocation39_spill] sm:$0xff] }
 0x3a6   : > { %1830 = vperm.xlu1 %2863, %v1716_v59  }
 0x3a7   : > { %1967 = vperm.xlu0 %2864, %v1785_v16  }
 0x3aa   : > { %1840 = vperm.xlu1 %2863, %v1718_v7  }
 0x3ab   : > { %1977 = vperm.xlu0 %2864, %v1787_v58  }
 0x3ae   : > { %1942 = vperm.xlu1 %2863, %v1780_v43  }
 0x3b2   : > { %1850 = vperm.xlu1 %2863, %v1720_v6  }
 0x3b6   : > { %1952 = vperm.xlu1 %2863, %v1782_v34  }
 0x3ba   : > { %1860 = vperm.xlu1 %2863, %v1722_v50  }
 0x3be   : > { %1962 = vperm.xlu1 %2863, %v1784_v25  }
 0x3c2   : > { %1972 = vperm.xlu1 %2863, %v1786_v24  }
 0x3f9   : > { %v1796_v23 = vpop.permute.xlu1 %1795 }
 0x3fa   : > { %v1791_v52 = vpop.permute.xlu0 %1790  ;;  %v1870_v51 = vmul.f32 %v1796_v23, %v3760_v21  ;;  %v1871_v59 = vmul.f32 %v1796_v23, %v3766_v0 }
 0x3fb   : > { %v1868_v0 = vmul.f32 %v1791_v52, %v3754_v18  ;;  %v1869_v47 = vmul.f32 %v1791_v52, %v3756_v19 }
 0x3fd   : > { %v1806_v22 = vpop.permute.xlu1 %1805 }
 0x3fe   : > { %v1908_v28 = vpop.permute.xlu0 %1907  ;;  %v1874_v3 = vmul.f32 %v1806_v22, %v3780_v36  ;;  %v1875_v49 = vmul.f32 %v1806_v22, %v3788_v42 }
 0x3ff   : > { %v1982_v35 = vadd.f32 %v1908_v28, %v1870_v51  ;;  %v1983_v56 = vadd.f32 %v1908_v28, %v1871_v59 }
 0x401   : > { %v2476_v27 = vmul.f32 -1.442695, %v1982_v35  ;;  %v2477_v9 = vmul.f32 -1.442695, %v1983_v56  ;;  %v1801_v61 = vpop.permute.xlu1 %1800 }
 0x402   : > { %v1918_v2 = vpop.permute.xlu0 %1917  ;;  %v1872_v39 = vmul.f32 %v1801_v61, %v4625_v60  ;;  %v1873_v50 = vmul.f32 %v1801_v61, %v4626_v44 }
 0x403   : > { %v1986_v7 = vadd.f32 %v1918_v2, %v1874_v3  ;;  %3001 = vpow2.f32 %v2476_v27  ;;  %v1987_v32 = vadd.f32 %v1918_v2, %v1875_v49  ;;  %v4631_v2 = vld [vmem:[#allocation16_spill] sm:$0xff] }
 0x404   : > { %3003 = vpow2.f32 %v2477_v9 }
 0x405   : > { %v2480_v53 = vmul.f32 -1.442695, %v1986_v7  ;;  %v1903_v21 = vpop.permute.xlu1 %1902  ;;  %v2481_v36 = vmul.f32 -1.442695, %v1987_v32  ;;  %v4632_v7 = vld [vmem:[#allocation17_spill] sm:$0xff] }
 0x406   : > { %v1928_v8 = vpop.permute.xlu0 %1927  ;;  %v1980_v29 = vadd.f32 %v1903_v21, %v1868_v0  ;;  %v1981_v63 = vadd.f32 %v1903_v21, %v1869_v47 }
 0x407   : > { %3005 = vpow2.f32 %v2480_v53 }
 0x408   : > { %v2474_v6 = vmul.f32 -1.442695, %v1980_v29  ;;  %3007 = vpow2.f32 %v2481_v36  ;;  %v2475_v48 = vmul.f32 -1.442695, %v1981_v63 }
 0x409   : > { %v1816_v15 = vpop.permute.xlu1 %1815 }
 0x40a   : > { %v1878_v13 = vmul.f32 %v1816_v15, %v3710_v31  ;;  %v1879_v42 = vmul.f32 %v1816_v15, %v4624_v20  ;;  %v1938_v1 = vpop.permute.xlu0 %1937  ;;  %3009 = vpow2.f32 %v2474_v6 }
 0x40b   : > { %3011 = vpow2.f32 %v2475_v48 }
 0x40c   : > { %v1990_v55 = vadd.f32 %v1928_v8, %v1878_v13  ;;  %v1991_v41 = vadd.f32 %v1928_v8, %v1879_v42  ;;  %v4633_v8 = vld [vmem:[#allocation29_spill] sm:$0xff] }
 0x40d   : > { %v1811_v33 = vpop.permute.xlu1 %1810  ;;  %v3002_v18 = vpop.eup %3001 }
 0x40e   : > { %v2484_v12 = vmul.f32 -1.442695, %v1990_v55  ;;  %v1836_v38 = vpop.permute.xlu0 %1835  ;;  %v3004_v19 = vpop.eup %3003  ;;  %v2485_v30 = vmul.f32 -1.442695, %v1991_v41  ;;  %v2038_v10 = vadd.f32 1.0, %v3002_v18  ;;  %v1876_v49 = vmul.f32 %v1811_v33, %v4631_v2  ;;  %v4635_v55 = vld [vmem:[#allocation19_spill] sm:$0xff] }
 0x40f   : > { %v2039_v37 = vadd.f32 1.0, %v3004_v19  ;;  %v1886_v16 = vmul.f32 %v1836_v38, %v4627_v54  ;;  %v1887_v58 = vmul.f32 %v1836_v38, %v4628_v46  ;;  %v1877_v32 = vmul.f32 %v1811_v33, %v4632_v7  ;;  %v4636_v33 = vld [vmem:[#allocation20_spill] sm:$0xff]  ;;  %v4638_v54 = vld [vmem:[#allocation34_spill] sm:$0xff] }
 0x410   : > { %3013 = vpow2.f32 %v2484_v12 }
 0x411   : > { %v3006_v31 = vpop.eup %3005  ;;  %v1913_v17 = vpop.permute.xlu1 %1912  ;;  %3015 = vpow2.f32 %v2485_v30 }
 0x412   : > { %v1984_v11 = vadd.f32 %v1913_v17, %v1872_v39  ;;  %v1985_v14 = vadd.f32 %v1913_v17, %v1873_v50  ;;  %v1846_v26 = vpop.permute.xlu0 %1845  ;;  %v2042_v62 = vadd.f32 1.0, %v3006_v31  ;;  %3017 = vrcp.f32 %v2038_v10  ;;  %v3008_v24 = vpop.eup %3007 }
 0x413   : > { %3019 = vrcp.f32 %v2039_v37  ;;  %v2043_v35 = vadd.f32 1.0, %v3008_v24  ;;  %v1890_v47 = vmul.f32 %v1846_v26, %v4633_v8 }
 0x414   : > { %v2478_v45 = vmul.f32 -1.442695, %v1984_v11  ;;  %v2479_v4 = vmul.f32 -1.442695, %v1985_v14  ;;  %3021 = vrcp.f32 %v2042_v62  ;;  %v3010_v28 = vpop.eup %3009  ;;  %v4637_v62 = vld [vmem:[#allocation33_spill] sm:$0xff] }
 0x415   : > { %v1826_v43 = vpop.permute.xlu1 %1825  ;;  %v3012_v9 = vpop.eup %3011  ;;  %v2036_v21 = vadd.f32 1.0, %v3010_v28 }
 0x416   : > { %v1882_v34 = vmul.f32 %v1826_v43, %v4629_v40  ;;  %v1883_v25 = vmul.f32 %v1826_v43, %v4630_v57  ;;  %v1948_v5 = vpop.permute.xlu0 %1947  ;;  %3023 = vpow2.f32 %v2478_v45  ;;  %v2037_v42 = vadd.f32 1.0, %v3012_v9  ;;  %v2166_v57 = vld [vmem:[%s3506_s24 + $0x10] sm:$0xff] }
 0x417   : > { %v1998_v23 = vadd.f32 %v1948_v5, %v1886_v16  ;;  %v1999_v52 = vadd.f32 %v1948_v5, %v1887_v58  ;;  %3025 = vpow2.f32 %v2479_v4 }
 0x418   : > { %v1994_v51 = vadd.f32 %v1938_v1, %v1882_v34  ;;  %v1995_v59 = vadd.f32 %v1938_v1, %v1883_v25  ;;  %v4634_v1 = vld [vmem:[#allocation30_spill] sm:$0xff] }
 0x419   : > { %v1821_v22 = vpop.permute.xlu1 %1820  ;;  %3027 = vtanh.f32 %v1998_v23  ;;  %v1891_v6 = vmul.f32 %v1846_v26, %v4634_v1 }
 0x41a   : > { %v2488_v56 = vmul.f32 -1.442695, %v1994_v51  ;;  %v2489_v3 = vmul.f32 -1.442695, %v1995_v59  ;;  %v1856_v27 = vpop.permute.xlu0 %1855  ;;  %3029 = vtanh.f32 %v1999_v52  ;;  %v3014_v61 = vpop.eup %3013  ;;  %v1880_v41 = vmul.f32 %v1821_v22, %v4635_v55  ;;  %v2167_v52 = vld [vmem:[%s3506_s24 + $0x18] sm:$0xff]  ;;  %v4639_v51 = vld [vmem:[#allocation37_spill] sm:$0xff] }
 0x41b   : > { %v3016_v53 = vpop.eup %3015  ;;  %v2086_v0 = vadd.f32 1.0, %v3014_v61  ;;  %v1881_v18 = vmul.f32 %v1821_v22, %v4636_v33  ;;  %v1894_v45 = vmul.f32 %v1856_v27, %v4637_v62  ;;  %v1895_v16 = vmul.f32 %v1856_v27, %v4638_v54  ;;  %v4640_v22 = vld [vmem:[#allocation38_spill] sm:$0xff] }
 0x41c   : > { %3031 = vpow2.f32 %v2488_v56  ;;  %v2087_v36 = vadd.f32 1.0, %v3016_v53  ;;  %v3018_v20 = vpop.eup %3017 }
 0x41d   : > { %3033 = vpow2.f32 %v2489_v3  ;;  %v1923_v29 = vpop.permute.xlu1 %1922  ;;  %v3020_v48 = vpop.eup %3019 }
 0x41e   : > { %3035 = vrcp.f32 %v2043_v35  ;;  %v1988_v63 = vadd.f32 %v1923_v29, %v1876_v49  ;;  %v1989_v15 = vadd.f32 %v1923_v29, %v1877_v32  ;;  %v1958_v13 = vpop.permute.xlu0 %1957  ;;  %v4391_v19 = vpop.eup %3021 }
 0x41f   : > { %3037 = vrcp.f32 %v2086_v0  ;;  %v2002_v30 = vadd.f32 %v1958_v13, %v1890_v47  ;;  %v2003_v44 = vadd.f32 %v1958_v13, %v1891_v6 }
 0x420   : > { %3039 = vrcp.f32 %v2087_v36  ;;  %v2482_v12 = vmul.f32 -1.442695, %v1988_v63  ;;  %v2483_v38 = vmul.f32 -1.442695, %v1989_v15  ;;  %v3024_v39 = vpop.eup %3023 }
 0x421   : > { %3041 = vrcp.f32 %v2036_v21  ;;  %v1933_v60 = vpop.permute.xlu1 %1932  ;;  %v3026_v17 = vpop.eup %3025  ;;  %v2040_v4 = vadd.f32 1.0, %v3024_v39 }
 0x422   : > { %3043 = vpow2.f32 %v2482_v12  ;;  %v1992_v50 = vadd.f32 %v1933_v60, %v1880_v41  ;;  %v1993_v31 = vadd.f32 %v1933_v60, %v1881_v18  ;;  %v1866_v10 = vpop.permute.xlu0 %1865  ;;  %v2041_v56 = vadd.f32 1.0, %v3026_v17  ;;  %v2170_v12 = vld [vmem:[%s3506_s24 + $0x30] sm:$0xff] }
 0x423   : > { %3045 = vrcp.f32 %v2037_v42  ;;  %v3028_v37 = vpop.eup %3027  ;;  %v1898_v59 = vmul.f32 %v1866_v10, %v4639_v51  ;;  %v1899_v28 = vmul.f32 %v1866_v10, %v4640_v22 }
 0x424   : > { %3047 = vpow2.f32 %v2483_v38  ;;  %v2486_v11 = vmul.f32 -1.442695, %v1992_v50  ;;  %v2487_v14 = vmul.f32 -1.442695, %v1993_v31  ;;  %v3030_v26 = vpop.eup %3029  ;;  %v2182_v49 = vmul.f32 %v3028_v37, %v3018_v20  ;;  %v4642_v38 = vld [vmem:[#allocation24_spill] sm:$0xff] }
 0x425   : > { %3049 = vtanh.f32 %v2002_v30  ;;  %v1831_v46 = vpop.permute.xlu1 %1830  ;;  %v2183_v7 = vmul.f32 %v3030_v26, %v3020_v48  ;;  %v4641_v48 = vld [vmem:[#allocation23_spill] sm:$0xff] }
 0x426   : > { %v3032_v58 = vpop.eup %3031  ;;  %3051 = vtanh.f32 %v2003_v44  ;;  %v1968_v43 = vpop.permute.xlu0 %1967  ;;  %v1884_v33 = vmul.f32 %v1831_v46, %v4641_v48  ;;  %v1885_v30 = vmul.f32 %v1831_v46, %v4642_v38  ;;  %v2171_v44 = vld [vmem:[%s3506_s24 + $0x38] sm:$0xff] }
 0x427   : > { %v3034_v40 = vpop.eup %3033  ;;  %v2090_v34 = vadd.f32 1.0, %v3032_v58  ;;  %3053 = vpow2.f32 %v2486_v11  ;;  %v2006_v25 = vadd.f32 %v1968_v43, %v1894_v45  ;;  %v2007_v5 = vadd.f32 %v1968_v43, %v1895_v16  ;;  %v4643_v43 = vld [vmem:[#allocation27_spill] sm:$0xff] }
 0x428   : > { %v4396_v24 = vpop.eup %3035  ;;  %v2091_v23 = vadd.f32 1.0, %v3034_v40  ;;  %3055 = vpow2.f32 %v2487_v14 }
 0x429   : > { %v3038_v35 = vpop.eup %3037  ;;  %3057 = vrcp.f32 %v2090_v34  ;;  %v2492_v3 = vmul.f32 -1.442695, %v2006_v25  ;;  %v2493_v27 = vmul.f32 -1.442695, %v2007_v5  ;;  %v4401_v9 = vpop.permute.xlu1 %1840  ;;  %v4644_v25 = vld [vmem:[#allocation28_spill] sm:$0xff] }
 0x42a   : > { %v3040_v61 = vpop.eup %3039  ;;  %3059 = vrcp.f32 %v2091_v23  ;;  %v2174_v2 = vmul.f32 %v3038_v35, %v2166_v57  ;;  %v1978_v32 = vpop.permute.xlu0 %1977  ;;  %v1888_v40 = vmul.f32 %v4401_v9, %v4643_v43  ;;  %v1889_v5 = vmul.f32 %v4401_v9, %v4644_v25  ;;  %v4646_v9 = vld [vmem:[#allocation32_spill] sm:$0xff] }
 0x42b   : > { %v4403_v53 = vpop.eup %3041  ;;  %v2175_v21 = vmul.f32 %v3040_v61, %v2167_v52  ;;  %3061 = vpow2.f32 %v2492_v3  ;;  %v2010_v0 = vadd.f32 %v1978_v32, %v1898_v59  ;;  %v2011_v8 = vadd.f32 %v1978_v32, %v1899_v28  ;;  %v4645_v3 = vld [vmem:[#allocation31_spill] sm:$0xff] }
 0x42c   : > { %v3044_v47 = vpop.eup %3043  ;;  %v2190_v29 = vadd.f32 %v2182_v49, %v2174_v2  ;;  %3063 = vpow2.f32 %v2493_v27  ;;  %v2165_v49 = vld [vmem:[%s3506_s24 + $0x8] sm:$0xff] }
 0x42d   : > { %v4405_v36 = vpop.eup %3045  ;;  %3065 = vrcp.f32 %v2040_v4  ;;  %v2191_v63 = vadd.f32 %v2183_v7, %v2175_v21  ;;  %v2084_v15 = vadd.f32 1.0, %v3044_v47  ;;  %v1943_v13 = vpop.permute.xlu1 %1942  ;;  %v2496_v42 = vmul.f32 -1.442695, %v2010_v0 }
 0x42e   : > { %v3048_v20 = vpop.eup %3047  ;;  %3067 = vrcp.f32 %v2041_v56  ;;  %2222 = vst [vmem:[%s4408_s26 + $0x10] sm:$0xff] %v2190_v29  ;;  %v2497_v55 = vmul.f32 -1.442695, %v2011_v8  ;;  %v1996_v31 = vadd.f32 %v1943_v13, %v1884_v33  ;;  %v1997_v17 = vadd.f32 %v1943_v13, %v1885_v30  ;;  %v2164_v56 = vld [vmem:[%s3506_s24] sm:$0xff] }
 0x42f   : > { %v3050_v1 = vpop.eup %3049  ;;  %3069 = vtanh.f32 %v2190_v29  ;;  %2223 = vst [vmem:[%s4408_s26 + $0x18] sm:$0xff] %v2191_v63  ;;  %v2085_v6 = vadd.f32 1.0, %v3048_v20  ;;  %v4648_v20 = vld [vmem:[#allocation36_spill] sm:$0xff] }
 0x430   : > { %v3052_v41 = vpop.eup %3051  ;;  %3071 = vrcp.f32 %v2084_v15  ;;  %v2186_v14 = vmul.f32 %v3050_v1, %v4391_v19  ;;  %v4647_v15 = vld [vmem:[#allocation35_spill] sm:$0xff] }
 0x431   : > { %v3054_v18 = vpop.eup %3053  ;;  %3073 = vrcp.f32 %v2085_v6  ;;  %v1851_v60 = vpop.permute.xlu1 %1850  ;;  %v2187_v54 = vmul.f32 %v3052_v41, %v4396_v24 }
 0x432   : > { %v3056_v39 = vpop.eup %3055  ;;  %v2088_v50 = vadd.f32 1.0, %v3054_v18  ;;  %3075 = vpow2.f32 %v2496_v42  ;;  %v1892_v27 = vmul.f32 %v1851_v60, %v4645_v3  ;;  %v1893_v61 = vmul.f32 %v1851_v60, %v4646_v9 }
 0x433   : > { %v3058_v10 = vpop.eup %3057  ;;  %3077 = vpow2.f32 %v2497_v55  ;;  %v2089_v26 = vadd.f32 1.0, %v3056_v39 }
 0x434   : > { %v3060_v37 = vpop.eup %3059  ;;  %3079 = vtanh.f32 %v2191_v63  ;;  %v2178_v11 = vmul.f32 %v3058_v10, %v2170_v12 }
 0x435   : > { %v3062_v62 = vpop.eup %3061  ;;  %v2179_v45 = vmul.f32 %v3060_v37, %v2171_v44  ;;  %3081 = vrcp.f32 %v2088_v50  ;;  %v1953_v16 = vpop.permute.xlu1 %1952 }
 0x436   : > { %v3064_v46 = vpop.eup %3063  ;;  %v2194_v58 = vadd.f32 %v2186_v14, %v2178_v11  ;;  %v2142_v4 = vadd.f32 1.0, %v3062_v62  ;;  %3083 = vtanh.f32 %v1996_v31  ;;  %v2000_v23 = vadd.f32 %v1953_v16, %v1888_v40  ;;  %v2168_v31 = vld [vmem:[%s3506_s24 + $0x20] sm:$0xff]  ;;  %v2169_v11 = vld [vmem:[%s3506_s24 + $0x28] sm:$0xff]  ;;  %s2263_s24 = sshll.u32 %s4408_s26, 4  ;;  %s4459_s24 = int_to_ptr.vmem [resolvable:$true] %s2263_s24 }
 0x437   : > { %v4420_v34 = vpop.eup %3065  ;;  %v2195_v57 = vadd.f32 %v2187_v54, %v2179_v45  ;;  %v2143_v19 = vadd.f32 1.0, %v3064_v46  ;;  %3085 = vtanh.f32 %v1997_v17  ;;  %v2001_v51 = vadd.f32 %v1953_v16, %v1889_v5  ;;  %s3189_s15 = scalar_lea.vmem %s4459_s24, 1024  ;;  %p3196_p5 = scmp.lt.s32.totalorder %s4459_s24, %s3194_s13 }
 0x438   : > { %v4424_v24 = vpop.eup %3067  ;;  %2226 = vst [vmem:[%s4408_s26 + $0x30] sm:$0xff] %v2194_v58  ;;  %3087 = vrcp.f32 %v2089_v26  ;;  %p3190_p13 = scmp.ne.s32.totalorder %s4459_s24, %s3189_s15  ;;  %p3197_p7 = scmp.lt.s32.totalorder %s3195_s23, %s3189_s15 }
 0x439   : > { %v3070_v52 = vpop.eup %3069  ;;  %3089 = vtanh.f32 %v2194_v58  ;;  %2227 = vst [vmem:[%s4408_s26 + $0x38] sm:$0xff] %v2195_v57  ;;  %v1861_v59 = vpop.permute.xlu1 %1860 }
 0x43a   : > { %v3072_v22 = vpop.eup %3071  ;;  %3091 = vrcp.f32 %v2142_v4  ;;  %v1896_v13 = vmul.f32 %v1861_v59, %v4647_v15  ;;  %v1897_v42 = vmul.f32 %v1861_v59, %v4648_v20  ;;  %p3191_p11 = pnand %p3190_p13, %p4649_p1  ;;  %p3198_p9 = por %p3197_p7, %p3196_p5 }
 0x43b   : > { %v3074_v28 = vpop.eup %3073  ;;  %3093 = vrcp.f32 %v2143_v19  ;;  %v2172_v63 = vmul.f32 %v3072_v22, %v2164_v56 }
 0x43c   : > { %v3076_v35 = vpop.eup %3075  ;;  %3095 = vtanh.f32 %v2000_v23  ;;  %v2173_v6 = vmul.f32 %v3074_v28, %v2165_v49  ;;  %p3192_p10 = pneg %p3191_p11 }
 0x43d   : > { %v3078_v2 = vpop.eup %3077  ;;  %v2146_v7 = vadd.f32 1.0, %v3076_v35  ;;  %3097 = vtanh.f32 %v2001_v51  ;;  %v1963_v32 = vpop.permute.xlu1 %1962 }
 0x43e   : > { %v3080_v21 = vpop.eup %3079  ;;  %3099 = vtanh.f32 %v2195_v57  ;;  %v2147_v0 = vadd.f32 1.0, %v3078_v2  ;;  %v2004_v8 = vadd.f32 %v1963_v32, %v1892_v27  ;;  %v2005_v47 = vadd.f32 %v1963_v32, %v1893_v61  ;;  %p3199_p3 = pnand %p3198_p9, %p3192_p10 }
 0x43f   : > { %v3082_v29 = vpop.eup %3081  ;;  %3101 = vrcp.f32 %v2146_v7 }
 0x440   : > { %v3084_v1 = vpop.eup %3083  ;;  %3103 = vrcp.f32 %v2147_v0  ;;  %v2490_v55 = vmul.f32 -1.442695, %v2004_v8  ;;  %v2491_v41 = vmul.f32 -1.442695, %v2005_v47  ;;  %v2176_v45 = vmul.f32 %v3082_v29, %v2168_v31 }
 0x441   : > { %v3086_v48 = vpop.eup %3085  ;;  %v2180_v33 = vmul.f32 %v3084_v1, %v4403_v53  ;;  %v1973_v18 = vpop.permute.xlu1 %1972 }
 0x442   : > { %v3088_v12 = vpop.eup %3087  ;;  %v2181_v38 = vmul.f32 %v3086_v48, %v4405_v36  ;;  %3105 = vpow2.f32 %v2490_v55  ;;  %v2008_v30 = vadd.f32 %v1973_v18, %v1896_v13  ;;  %v2009_v60 = vadd.f32 %v1973_v18, %v1897_v42 }
 0x443   : > { %v3090_v39 = vpop.eup %3089  ;;  %v2188_v44 = vadd.f32 %v2180_v33, %v2172_v63  ;;  %3107 = vpow2.f32 %v2491_v41  ;;  %v2177_v46 = vmul.f32 %v3088_v12, %v2169_v11 }
 0x444   : > { %v3092_v50 = vpop.eup %3091  ;;  %v4437_v10 = vadd.f32 %v2181_v38, %v2173_v6  ;;  %v2494_v53 = vmul.f32 -1.442695, %v2008_v30  ;;  %v2495_v17 = vmul.f32 -1.442695, %v2009_v60 }
 0x445   : > { %v3094_v37 = vpop.eup %3093  ;;  %v2206_v14 = vmul.f32 %v3092_v50, %v3070_v52  ;;  %2220 = vst [vmem:[%s4408_s26] sm:$0xff] %v2188_v44 }
 0x446   : > { %v3096_v36 = vpop.eup %3095  ;;  %v2207_v26 = vmul.f32 %v3094_v37, %v3080_v21  ;;  %2221 = vst [vmem:[%s4408_s26 + $0x8] sm:$0xff] %v4437_v10  ;;  %3109 = vpow2.f32 %v2494_v53 }
 0x447   : > { %v3098_v62 = vpop.eup %3097  ;;  %2214 = vst [vmem:[%s4444_s12 + $0x10] sm:$0xff] %v2206_v14  ;;  %v2184_v54 = vmul.f32 %v3096_v36, %v4420_v34  ;;  %3111 = vpow2.f32 %v2495_v17 }
 0x448   : > { %v3100_v16 = vpop.eup %3099  ;;  %2215 = vst [vmem:[%s4444_s12 + $0x18] sm:$0xff] %v2207_v26  ;;  %v2185_v58 = vmul.f32 %v3098_v62, %v4424_v24  ;;  %3113 = vtanh.f32 %v2188_v44 }
 0x449   : > { %v3102_v4 = vpop.eup %3101  ;;  %v2192_v43 = vadd.f32 %v2184_v54, %v2176_v45 }
 0x44a   : > { %v3104_v40 = vpop.eup %3103  ;;  %v2210_v57 = vmul.f32 %v3102_v4, %v3090_v39  ;;  %v2193_v34 = vadd.f32 %v2185_v58, %v2177_v46 }
 0x44b   : > { %v2211_v19 = vmul.f32 %v3104_v40, %v3100_v16  ;;  %2224 = vst [vmem:[%s4408_s26 + $0x20] sm:$0xff] %v2192_v43 }
 0x44c   : > { %v3106_v25 = vpop.eup %3105  ;;  %2218 = vst [vmem:[%s4444_s12 + $0x30] sm:$0xff] %v2210_v57  ;;  %2225 = vst [vmem:[%s4408_s26 + $0x28] sm:$0xff] %v2193_v34 }
 0x44d   : > { %v3108_v5 = vpop.eup %3107  ;;  %2219 = vst [vmem:[%s4444_s12 + $0x38] sm:$0xff] %v2211_v19  ;;  %v2140_v24 = vadd.f32 1.0, %v3106_v25 }
 0x44e   : > { %3202 = shalt.err (!%p3199_p3)
}
 0x44f   : > { %s3203_s25 = scalar_lea.hbm %s4457_s18, 1024  ;;  %s3207_s26 = scalar_lea.hbm %s4560_s8, 2048 }
 0x450   : > { %p3204_p12 = scmp.ne.s32.totalorder %s4457_s18, %s3203_s25  ;;  %p3208_p2 = scmp.lt.u32.totalorder %s4457_s18, %s4560_s8 }
 0x451   : > { %p3209_p4 = scmp.lt.u32.totalorder %s3207_s26, %s3203_s25  ;;  %p3211_p13 = scmp.lt.u32.totalorder %s3203_s25, %s4457_s18 }
 0x452   : > { %p3205_p8 = pnand %p3204_p12, %p4649_p1 }
 0x453   : > { %p3210_p6 = por %p3209_p4, %p3208_p2 }
 0x454   : > { %p3206_p0 = pneg %p3205_p8 }
 0x455   : > { %p3212_p11 = por %p3211_p13, %p3210_p6 }
 0x457   : > { %p3213_p10 = pnand %p3212_p11, %p3206_p0 }
 0x459   : > { %3216 = shalt.err (!%p3213_p10)
}
 0x45a   : > { %s3301_s15 = smov 256   ;;  %s3302_s22 = smov 16   ;;  %3115 = vtanh.f32 %v4437_v10  ;;  %v2141_v23 = vadd.f32 1.0, %v3108_v5  ;;  %v3110_v52 = vpop.eup %3109 }
 0x45b   : > { %2805 = dma.vmem_to_hbm [thread:$0]  (%p4649_p1), %s4459_s24, 1024, %s4457_s18, %s2234_s20, %s3301_s15, %s3301_s15, %s3302_s22   ;;  %3117 = vrcp.f32 %v2140_v24  ;;  %v3112_v51 = vpop.eup %3111  ;;  %v2144_v59 = vadd.f32 1.0, %v3110_v52 }
 0x45c   : > { %3119 = vrcp.f32 %v2141_v23  ;;  %v2145_v22 = vadd.f32 1.0, %v3112_v51  ;;  %v3114_v28 = vpop.eup %3113  ;;  %s2247_s24 = sshll.u32 %s4444_s12, 4  ;;  %s4501_s13 = scalar_lea.hbm %s4559_s7, %s2507_s0  ;;  %s4503_s24 = int_to_ptr.vmem [resolvable:$true] %s2247_s24 }
 0x45d   : > { %3121 = vtanh.f32 %v2192_v43  ;;  %s2229_s23 = scalar_lea.sflag [#allocation4], %s3491_s19  ;;  %s3217_s25 = scalar_lea.vmem %s4503_s24, 1024 }
 0x45e   : > { %3123 = vtanh.f32 %v2193_v34  ;;  %p3218_p5 = scmp.ne.s32.totalorder %s4503_s24, %s3217_s25  ;;  %s3303_s14 = smov [#allocation7]  }
 0x45f   : > { %3125 = vrcp.f32 %v2144_v59  ;;  %s3221_s9 = sshll.u32 %s3303_s14, 4  ;;  %s3222_s9 = int_to_ptr.vmem [resolvable:$false] %s3221_s9 }
 0x460   : > { %3127 = vrcp.f32 %v2145_v22  ;;  %p3219_p7 = pnand %p3218_p5, %p4649_p1  ;;  %s3223_s10 = scalar_lea.vmem %s3222_s9, 2048 }
 0x461   : > { %p3224_p3 = scmp.lt.s32.totalorder %s4503_s24, %s3222_s9  ;;  %p3225_p12 = scmp.lt.s32.totalorder %s3223_s10, %s3217_s25 }
 0x462   : > { %p3220_p9 = pneg %p3219_p7 }
 0x463   : > { %p3226_p8 = por %p3225_p12, %p3224_p3 }
 0x464   : > { %v3116_v35 = vpop.eup %3115 }
 0x465   : > { %v3118_v56 = vpop.eup %3117  ;;  %p3227_p0 = pnand %p3226_p8, %p3220_p9 }
 0x466   : > { %v3120_v3 = vpop.eup %3119  ;;  %v2204_v27 = vmul.f32 %v3118_v56, %v3114_v28 }
 0x467   : > { %v2205_v9 = vmul.f32 %v3120_v3, %v3116_v35  ;;  %v3122_v61 = vpop.eup %3121 }
 0x468   : > { %2212 = vst [vmem:[%s4444_s12] sm:$0xff] %v2204_v27  ;;  %v3124_v2 = vpop.eup %3123 }
 0x469   : > { %2213 = vst [vmem:[%s4444_s12 + $0x8] sm:$0xff] %v2205_v9  ;;  %v3126_v49 = vpop.eup %3125 }
 0x46a   : > { %v3128_v7 = vpop.eup %3127  ;;  %v2208_v32 = vmul.f32 %v3126_v49, %v3122_v61 }
 0x46b   : > { %v2209_v21 = vmul.f32 %v3128_v7, %v3124_v2 }
 0x46c   : > { %2216 = vst [vmem:[%s4444_s12 + $0x20] sm:$0xff] %v2208_v32 }
 0x46d   : > { %2217 = vst [vmem:[%s4444_s12 + $0x28] sm:$0xff] %v2209_v21 }
 0x46e   : > { %3230 = shalt.err (!%p3227_p0)
}
 0x46f   : > { %s3231_s12 = scalar_lea.hbm %s4501_s13, 1024  ;;  %s3235_s29 = scalar_lea.hbm %s4559_s7, 2048 }
 0x470   : > { %p3232_p2 = scmp.ne.s32.totalorder %s4501_s13, %s3231_s12  ;;  %p3236_p13 = scmp.lt.u32.totalorder %s4501_s13, %s4559_s7 }
 0x471   : > { %p3237_p11 = scmp.lt.u32.totalorder %s3235_s29, %s3231_s12  ;;  %p3239_p5 = scmp.lt.u32.totalorder %s3231_s12, %s4501_s13 }
 0x472   : > { %p3233_p4 = pnand %p3232_p2, %p4649_p1 }
 0x473   : > { %p3238_p10 = por %p3237_p11, %p3236_p13 }
 0x474   : > { %p3234_p6 = pneg %p3233_p4 }
 0x475   : > { %p3240_p7 = por %p3239_p5, %p3238_p10 }
 0x477   : > { %p3241_p9 = pnand %p3240_p7, %p3234_p6 }
 0x479   : > { %3244 = shalt.err (!%p3241_p9)
}
 0x47a   : > { %2804 = dma.vmem_to_hbm [thread:$0]  (%p4649_p1), %s4503_s24, 1024, %s4501_s13, %s2229_s23, %s3301_s15, %s3301_s15, %s3302_s22  }
 0x47b PF: > { %s2278_s20 = sand.u32 1, %s3279_s27   ;;  %p4650_p3 = scmp.ne.s32.totalorder %s4594_s17, 0 }
 0x47c   : > { %p4651_p12 = scmp.ge.s32.totalorder %s3291_s30, 2  ;;  %s2279_s25 = scalar_lea.sflag [#allocation4], %s2278_s20 }
 0x47e   : > { %p2816_p8 = pnand %p4651_p12, %p4650_p3 }
 0x480   : > { %3270 = dma.done.wait (!%p2816_p8), %s2279_s25, 1024  }
 0x481   : > { %3272 = vsyncadd (!%p2816_p8), %s2279_s25, 4294966272  ;;  %s2288_s16 = scalar_lea.sflag [#allocation9], %s2278_s20 }
 0x482   : > { %3274 = dma.done.wait (!%p2816_p8), %s2288_s16, 1024  }
 0x483   : > { %3276 = vsyncadd (!%p2816_p8), %s2288_s16, 4294966272  ;;  %s4652_s19 = sld [smem:[#allocation14_spill]]  ;;  %s4653_s29 = sld [smem:[#allocation15_spill]] }
 0x484   : > { %p28_p1 = scmp.ge.s32.totalorder %s3374_s11, 4   ;;  %s4654_s27 = smov %s3283_s28 }
 0x485   : > { %s4656_s30 = smov %s3374_s11 }
 0x486   :  { %30 = sbr.rel (!%p28_p1) target bundleno = 11 (0xb), region = 123 }
 0x489   : > { %s4655_s28 = smov %s4652_s19 }
 0x48d   :  { %2293 = vsyncpa [#allocation3], 1 }
 0x48e   :  { %2295 = vsyncpa [#allocation3 + $0x1], 1 }
 0x48f   :  { %2296 = vsyncpa [#allocation6], 1 }
 0x490   :  { %2298 = vsyncpa [#allocation6 + $0x1], 1 }
 0x491   :  { %2299 = vsyncpa [#allocation4], 1 }
 0x492   :  { %2301 = vsyncpa [#allocation4 + $0x1], 1 }
 0x493   :  { %2302 = vsyncpa [#allocation9], 1 }
 0x494   :  { %2304 = vsyncpa [#allocation9 + $0x1], 1 }

</bundles_post_ra>
